<compile_context>
chip_gen: v6e
topology: v6e:2x2x1
jax: 0.10.0
libtpu: 0.0.40
codegen_flags: <defaults>
</compile_context>

<pallas_src>
import functools

import numpy as np
import jax
import jax.numpy as jnp
from jax import lax
from jax.experimental import pallas as pl
from jax.experimental.pallas import tpu as pltpu


# ----------------------------------------------------------------------------
# Fused kernel: full RK4 step of the conv ODE for a block of NB images.
# ----------------------------------------------------------------------------
def _rk4_fused_kernel(dt_ref, x_ref, w1_ref, b1_ref, w2_ref, b2_ref,
                      mw_ref, mp_ref, out_ref, *, P, M, offs):
    """Layout: "padded-flat", images along sublanes.

    State y: (R, P) with R = NB*C rows ordered image-major / channel-minor and
    P = (H+2)*(W+2) padded-image pixels in the lane axis.  Each image carries
    its own zero ring (true SAME zero padding), maintained by the interior
    masks.  A 3x3 tap (dh, dw) is a lane-shifted static slice (offset
    dh*(W+2)+dw); im2col = 9 slices stacked on sublanes + one MXU matmul with
    a block-diagonal (per-image) weight.  The first conv produces a
    margin-carrying (R, P+2M) intermediate so the second conv needs no
    margin concat at all.
    """
    f32 = jnp.float32
    R = x_ref.shape[1]

    dt = dt_ref[0].astype(f32)                 # scalar, from SMEM
    half_dt = 0.5 * dt
    w6 = dt * (1.0 / 6.0)
    w3 = dt * (1.0 / 3.0)

    y0 = x_ref[0].astype(f32)                  # (R, P), zero ring from wrapper pad
    mask_w = mw_ref[...]                       # (R, P+2M): interior only, zero margins
    mask_p = mp_ref[...]                       # (R, P)   : interior only
    w1 = w1_ref[...]                           # (R, 9R) block-diagonal
    b1 = b1_ref[...]                           # (R, 1)
    w2 = w2_ref[...]
    b2 = b2_ref[...]

    zmarg2 = jnp.zeros((R, 2 * M), f32)

    def odefunc(y):                            # (R, P) zero-ringed -> (R, P) zero-ringed
        # conv1: widen once, emit a margin-carrying (R, P+2M) intermediate.
        d0 = jnp.concatenate([zmarg2, y, zmarg2], axis=1)                 # (R, P+4M)
        p1 = jnp.concatenate(
            [d0[:, M + o: M + o + P + 2 * M] for o in offs], axis=0)      # (9R, P+2M)
        h1 = jnp.dot(w1, p1, preferred_element_type=f32) + b1
        h1 = jnp.maximum(h1, 0.0) * mask_w       # zero ring AND zero margins
        # conv2: slice taps straight out of the margin-carrying h1 (no concat).
        p2 = jnp.concatenate(
            [h1[:, M + o: M + o + P] for o in offs], axis=0)              # (9R, P)
        k = jnp.dot(w2, p2, preferred_element_type=f32) + b2
        return k * mask_p                        # zero ring

    # ---- classical RK4 step over [t0, t1] (== odeint(...)[1]) --------------
    # Incremental accumulation keeps vreg live ranges short.
    k = odefunc(y0)                              # k1
    acc = y0 + w6 * k
    k = odefunc(y0 + half_dt * k)                # k2
    acc = acc + w3 * k
    k = odefunc(y0 + half_dt * k)                # k3
    acc = acc + w3 * k
    k = odefunc(y0 + dt * k)                     # k4
    out_ref[0] = (acc + w6 * k).astype(out_ref.dtype)


# ----------------------------------------------------------------------------
# ODEBlockTimeLastK.forward
# ----------------------------------------------------------------------------
def ode_block_time_last_k_forward(x_nchw, t_list, final_time_K, params):
    """Equivalent of ODEBlockTimeLastK(odefunc, num_split, 'rk4', K)(x, t)."""
    w1, b1, w2, b2 = params
    dtype = x_nchw.dtype
    N, C, H, W = x_nchw.shape
    Hp, Wp = H + 2, W + 2
    P = Hp * Wp
    M = Wp + 1                                   # max |3x3 tap offset| in padded-flat coords

    # torch.cat(t, 0); torch.cat([t, one], 0); .type_as(x)
    one = jnp.asarray([final_time_K], dtype=dtype)
    all_time = jnp.concatenate([jnp.ravel(t) for t in t_list] + [one]).astype(dtype)
    dt = (all_time[1] - all_time[0]).astype(jnp.float32).reshape(1)   # SMEM scalar

    # Images per grid step: fill the 8-sublane vreg height (R = NB*C == 8 when possible).
    nb = 8 // C if (0 < C <= 8 and 8 % C == 0 and N % max(8 // C, 1) == 0) else 1
    G = N // nb
    R = nb * C

    # Zero-pad the SAME-conv ring once in XLA and flatten lane-dense:
    # (N, C, H, W) -> (N, C, Hp, Wp) -> (G, NB*C, P), rows image-major/channel-minor.
    x_pad = jnp.pad(x_nchw.astype(jnp.float32), ((0, 0), (0, 0), (1, 1), (1, 1)))
    x_flat = x_pad.reshape(G, R, P)

    # Weight repack HWIO (3,3,Cin,Cout) -> block-diagonal (R, 9R):
    #   row = n*C + co ; col = t*R + n*C + ci   with t = kh*3 + kw (matches `offs`).
    eye = jnp.eye(nb, dtype=jnp.float32)

    def repack(w):
        w9 = jnp.transpose(w, (3, 0, 1, 2)).reshape(C, 9, C).astype(jnp.float32)  # (co,t,ci)
        return jnp.einsum('nm,cti->nctmi', eye, w9).reshape(R, 9 * R)

    w1b, w2b = repack(w1), repack(w2)
    b1r = jnp.tile(jnp.reshape(b1, (C, 1)).astype(jnp.float32), (nb, 1))   # (R, 1)
    b2r = jnp.tile(jnp.reshape(b2, (C, 1)).astype(jnp.float32), (nb, 1))

    # Interior masks (1 at real pixels, 0 on padding ring / margins), built host-side
    # and passed as kernel inputs (fixes the captured-constant error; VMEM-resident).
    m = np.zeros((Hp, Wp), np.float32)
    m[1:H + 1, 1:W + 1] = 1.0
    mp_np = np.ascontiguousarray(np.broadcast_to(m.reshape(1, P), (R, P)))
    mw_np = np.zeros((R, P + 2 * M), np.float32)
    mw_np[:, M:M + P] = mp_np
    mask_p = jnp.asarray(mp_np)
    mask_w = jnp.asarray(mw_np)

    # 3x3 tap offsets in padded-flat coords, (kh, kw) row-major to match the repack.
    offs = tuple(dh * Wp + dw for dh in (-1, 0, 1) for dw in (-1, 0, 1))
    kernel = functools.partial(_rk4_fused_kernel, P=P, M=M, offs=offs)

    y_flat = pl.pallas_call(
        kernel,
        out_shape=jax.ShapeDtypeStruct((G, R, P), jnp.float32),
        grid=(G,),
        in_specs=[
            pl.BlockSpec(memory_space=pltpu.MemorySpace.SMEM),     # dt (scalar path)
            pl.BlockSpec((1, R, P), lambda g: (g, 0, 0)),          # x block (NB images)
            pl.BlockSpec((R, 9 * R), lambda g: (0, 0)),            # w1 (VMEM-resident)
            pl.BlockSpec((R, 1), lambda g: (0, 0)),                # b1
            pl.BlockSpec((R, 9 * R), lambda g: (0, 0)),            # w2
            pl.BlockSpec((R, 1), lambda g: (0, 0)),                # b2
            pl.BlockSpec((R, P + 2 * M), lambda g: (0, 0)),        # interior mask (wide)
            pl.BlockSpec((R, P), lambda g: (0, 0)),                # interior mask (core)
        ],
        out_specs=pl.BlockSpec((1, R, P), lambda g: (g, 0, 0)),
        compiler_params=pltpu.CompilerParams(
            dimension_semantics=("parallel",)),   # v7x: 2 TCs split the batch
    )(dt, x_flat, w1b, b1r, w2b, b2r, mask_w, mask_p)

    # Unpad: (G, R, P) -> (N, C, Hp, Wp) -> interior (N, C, H, W).
    y = y_flat.reshape(N, C, Hp, Wp)[:, :, 1:H + 1, 1:W + 1]
    return y.astype(dtype)


# ----------------------------------------------------------------------------
# Pure-JAX reference (lax.conv) for validation.
# ----------------------------------------------------------------------------
def _odefunc_ref(x_nhwc, w1, b1, w2, b2):
    dn = ("NHWC", "HWIO", "NHWC")
    h = lax.conv_general_dilated(x_nhwc, w1, (1, 1), "SAME",
                                 dimension_numbers=dn) + b1[0]
    h = jnp.maximum(h, 0.0)
    return lax.conv_general_dilated(h, w2, (1, 1), "SAME",
                                    dimension_numbers=dn) + b2[0]


def _forward_ref(x_nchw, t_list, K, params):
    w1, b1, w2, b2 = params
    one = jnp.asarray([K], dtype=x_nchw.dtype)
    all_time = jnp.concatenate(list(t_list) + [one]).astype(x_nchw.dtype)
    dt = all_time[1] - all_time[0]
    y0 = jnp.transpose(x_nchw, (0, 2, 3, 1))
    f = lambda y: _odefunc_ref(y, w1, b1, w2, b2)
    k1 = f(y0)
    k2 = f(y0 + 0.5 * dt * k1)
    k3 = f(y0 + 0.5 * dt * k2)
    k4 = f(y0 + dt * k3)
    y1 = y0 + (dt / 6.0) * (k1 + 2.0 * k2 + 2.0 * k3 + k4)
    return jnp.transpose(y1, (0, 3, 1, 2))


if __name__ == "__main__":
    # Small deterministic setup consistent with the module's forward:
    #   x: NCHW image batch, t: list of 1-D time tensors, K: final time.
    N, C, H, W = 2, 4, 16, 16
    K_final = 1.0

    key = jax.random.PRNGKey(0)
    kx, kw1, kb1, kw2, kb2 = jax.random.split(key, 5)

    x = jax.random.normal(kx, (N, C, H, W), dtype=jnp.float32)
    # odefunc parameters (HWIO conv weights, channels preserved).
    w1 = 0.1 * jax.random.normal(kw1, (3, 3, C, C), dtype=jnp.float32)
    b1 = 0.1 * jax.random.normal(kb1, (1, C), dtype=jnp.float32)
    w2 = 0.1 * jax.random.normal(kw2, (3, 3, C, C), dtype=jnp.float32)
    b2 = 0.1 * jax.random.normal(kb2, (1, C), dtype=jnp.float32)
    params = (w1, b1, w2, b2)

    # t is a list of 1-D time tensors (as in the PyTorch forward).
    t_list = [jnp.array([0.0], dtype=jnp.float32),
              jnp.array([0.5], dtype=jnp.float32)]

    fwd = jax.jit(functools.partial(ode_block_time_last_k_forward,
                                    final_time_K=K_final, params=params))
    out = jax.block_until_ready(fwd(x, t_list))

    # Validate against a pure-JAX reference.
    ref = _forward_ref(x, t_list, K_final, params)
    assert out.shape == (N, C, H, W), out.shape
    err = float(jnp.max(jnp.abs(out - ref)))
    assert err < 5e-4, err

    print("KERNEL_OK")
</pallas_src>

<mosaic_0001>
module attributes {stable_mosaic.version = 11 : i64} {
  func.func @_rk4_fused_kernel(%arg0: i32, %arg1: memref<1xf32, #tpu.memory_space<smem>>, %arg2: memref<1x8x324xf32, #tpu.memory_space<vmem>>, %arg3: memref<8x72xf32, #tpu.memory_space<vmem>>, %arg4: memref<8x1xf32, #tpu.memory_space<vmem>>, %arg5: memref<8x72xf32, #tpu.memory_space<vmem>>, %arg6: memref<8x1xf32, #tpu.memory_space<vmem>>, %arg7: memref<8x362xf32, #tpu.memory_space<vmem>>, %arg8: memref<8x324xf32, #tpu.memory_space<vmem>>, %arg9: memref<1x8x324xf32, #tpu.memory_space<vmem>>) attributes {dimension_semantics = [#tpu.dimension_semantics<parallel>], iteration_bounds = array<i64: 1>, scalar_prefetch = 0 : i64, scratch_operands = 0 : i64, tpu.core_type = #tpu.core_type<tc>, window_params = [{transform_indices = @transform_0, window_bounds = array<i64: 1>}, {transform_indices = @transform_1, window_bounds = array<i64: 1, 8, 324>}, {pipeline_mode = #tpu.pipeline_mode<synchronous>, transform_indices = @transform_2, window_bounds = array<i64: 8, 72>}, {pipeline_mode = #tpu.pipeline_mode<synchronous>, transform_indices = @transform_3, window_bounds = array<i64: 8, 1>}, {pipeline_mode = #tpu.pipeline_mode<synchronous>, transform_indices = @transform_4, window_bounds = array<i64: 8, 72>}, {pipeline_mode = #tpu.pipeline_mode<synchronous>, transform_indices = @transform_5, window_bounds = array<i64: 8, 1>}, {pipeline_mode = #tpu.pipeline_mode<synchronous>, transform_indices = @transform_6, window_bounds = array<i64: 8, 362>}, {pipeline_mode = #tpu.pipeline_mode<synchronous>, transform_indices = @transform_7, window_bounds = array<i64: 8, 324>}, {transform_indices = @transform_8, window_bounds = array<i64: 1, 8, 324>}]} {
    %c0 = arith.constant 0 : index
    %0 = memref.load %arg1[%c0] : memref<1xf32, #tpu.memory_space<smem>>
    %cst = arith.constant 5.000000e-01 : f32
    %1 = arith.mulf %cst, %0 : f32
    %cst_0 = arith.constant 0.166666672 : f32
    %2 = arith.mulf %0, %cst_0 : f32
    %cst_1 = arith.constant 0.333333343 : f32
    %3 = arith.mulf %0, %cst_1 : f32
    %c0_2 = arith.constant 0 : index
    %c0_3 = arith.constant 0 : index
    %c0_4 = arith.constant 0 : index
    %4 = vector.load %arg2[%c0_2, %c0_3, %c0_4] : memref<1x8x324xf32, #tpu.memory_space<vmem>>, vector<1x8x324xf32>
    %5 = vector.shape_cast %4 : vector<1x8x324xf32> to vector<8x324xf32>
    %c0_5 = arith.constant 0 : index
    %c0_6 = arith.constant 0 : index
    %6 = vector.load %arg7[%c0_5, %c0_6] : memref<8x362xf32, #tpu.memory_space<vmem>>, vector<8x362xf32>
    %c0_7 = arith.constant 0 : index
    %c0_8 = arith.constant 0 : index
    %7 = vector.load %arg8[%c0_7, %c0_8] : memref<8x324xf32, #tpu.memory_space<vmem>>, vector<8x324xf32>
    %c0_9 = arith.constant 0 : index
    %c0_10 = arith.constant 0 : index
    %8 = vector.load %arg3[%c0_9, %c0_10] : memref<8x72xf32, #tpu.memory_space<vmem>>, vector<8x72xf32>
    %c0_11 = arith.constant 0 : index
    %c0_12 = arith.constant 0 : index
    %9 = vector.load %arg4[%c0_11, %c0_12] : memref<8x1xf32, #tpu.memory_space<vmem>>, vector<8x1xf32>
    %c0_13 = arith.constant 0 : index
    %c0_14 = arith.constant 0 : index
    %10 = vector.load %arg5[%c0_13, %c0_14] : memref<8x72xf32, #tpu.memory_space<vmem>>, vector<8x72xf32>
    %c0_15 = arith.constant 0 : index
    %c0_16 = arith.constant 0 : index
    %11 = vector.load %arg6[%c0_15, %c0_16] : memref<8x1xf32, #tpu.memory_space<vmem>>, vector<8x1xf32>
    %cst_17 = arith.constant 0.000000e+00 : f32
    %12 = vector.broadcast %cst_17 : f32 to vector<8x38xf32>
    %13 = tpu.concatenate %12, %5, %12 in 1 : vector<8x38xf32>, vector<8x324xf32>, vector<8x38xf32> -> vector<8x400xf32>
    %14 = vector.extract_strided_slice %13 {offsets = [0, 0], sizes = [8, 362], strides = [1, 1]} : vector<8x400xf32> to vector<8x362xf32>
    %15 = vector.extract_strided_slice %13 {offsets = [0, 1], sizes = [8, 362], strides = [1, 1]} : vector<8x400xf32> to vector<8x362xf32>
    %16 = vector.extract_strided_slice %13 {offsets = [0, 2], sizes = [8, 362], strides = [1, 1]} : vector<8x400xf32> to vector<8x362xf32>
    %17 = vector.extract_strided_slice %13 {offsets = [0, 18], sizes = [8, 362], strides = [1, 1]} : vector<8x400xf32> to vector<8x362xf32>
    %18 = vector.extract_strided_slice %13 {offsets = [0, 19], sizes = [8, 362], strides = [1, 1]} : vector<8x400xf32> to vector<8x362xf32>
    %19 = vector.extract_strided_slice %13 {offsets = [0, 20], sizes = [8, 362], strides = [1, 1]} : vector<8x400xf32> to vector<8x362xf32>
    %20 = vector.extract_strided_slice %13 {offsets = [0, 36], sizes = [8, 362], strides = [1, 1]} : vector<8x400xf32> to vector<8x362xf32>
    %21 = vector.extract_strided_slice %13 {offsets = [0, 37], sizes = [8, 362], strides = [1, 1]} : vector<8x400xf32> to vector<8x362xf32>
    %22 = vector.extract_strided_slice %13 {offsets = [0, 38], sizes = [8, 362], strides = [1, 1]} : vector<8x400xf32> to vector<8x362xf32>
    %23 = tpu.concatenate %14, %15, %16, %17, %18, %19, %20, %21, %22 in 0 : vector<8x362xf32>, vector<8x362xf32>, vector<8x362xf32>, vector<8x362xf32>, vector<8x362xf32>, vector<8x362xf32>, vector<8x362xf32>, vector<8x362xf32>, vector<8x362xf32> -> vector<72x362xf32>
    %cst_18 = arith.constant dense<0.000000e+00> : vector<8x362xf32>
    %24 = tpu.matmul %8, %23, %cst_18 {dimension_numbers = #tpu.dot_dimension_numbers<[1], [0], [0], [1], [0, 0, 1, 1], [], []>} : vector<8x72xf32>, vector<72x362xf32>, vector<8x362xf32> -> vector<8x362xf32>
    %25 = vector.broadcast %9 : vector<8x1xf32> to vector<8x362xf32>
    %26 = arith.addf %24, %25 : vector<8x362xf32>
    %cst_19 = arith.constant 0.000000e+00 : f32
    %27 = vector.broadcast %cst_19 : f32 to vector<8x362xf32>
    %28 = arith.maximumf %26, %27 : vector<8x362xf32>
    %29 = arith.mulf %28, %6 : vector<8x362xf32>
    %30 = vector.extract_strided_slice %29 {offsets = [0, 0], sizes = [8, 324], strides = [1, 1]} : vector<8x362xf32> to vector<8x324xf32>
    %31 = vector.extract_strided_slice %29 {offsets = [0, 1], sizes = [8, 324], strides = [1, 1]} : vector<8x362xf32> to vector<8x324xf32>
    %32 = vector.extract_strided_slice %29 {offsets = [0, 2], sizes = [8, 324], strides = [1, 1]} : vector<8x362xf32> to vector<8x324xf32>
    %33 = vector.extract_strided_slice %29 {offsets = [0, 18], sizes = [8, 324], strides = [1, 1]} : vector<8x362xf32> to vector<8x324xf32>
    %34 = vector.extract_strided_slice %29 {offsets = [0, 19], sizes = [8, 324], strides = [1, 1]} : vector<8x362xf32> to vector<8x324xf32>
    %35 = vector.extract_strided_slice %29 {offsets = [0, 20], sizes = [8, 324], strides = [1, 1]} : vector<8x362xf32> to vector<8x324xf32>
    %36 = vector.extract_strided_slice %29 {offsets = [0, 36], sizes = [8, 324], strides = [1, 1]} : vector<8x362xf32> to vector<8x324xf32>
    %37 = vector.extract_strided_slice %29 {offsets = [0, 37], sizes = [8, 324], strides = [1, 1]} : vector<8x362xf32> to vector<8x324xf32>
    %38 = vector.extract_strided_slice %29 {offsets = [0, 38], sizes = [8, 324], strides = [1, 1]} : vector<8x362xf32> to vector<8x324xf32>
    %39 = tpu.concatenate %30, %31, %32, %33, %34, %35, %36, %37, %38 in 0 : vector<8x324xf32>, vector<8x324xf32>, vector<8x324xf32>, vector<8x324xf32>, vector<8x324xf32>, vector<8x324xf32>, vector<8x324xf32>, vector<8x324xf32>, vector<8x324xf32> -> vector<72x324xf32>
    %cst_20 = arith.constant dense<0.000000e+00> : vector<8x324xf32>
    %40 = tpu.matmul %10, %39, %cst_20 {dimension_numbers = #tpu.dot_dimension_numbers<[1], [0], [0], [1], [0, 0, 1, 1], [], []>} : vector<8x72xf32>, vector<72x324xf32>, vector<8x324xf32> -> vector<8x324xf32>
    %41 = vector.broadcast %11 : vector<8x1xf32> to vector<8x324xf32>
    %42 = arith.addf %40, %41 : vector<8x324xf32>
    %43 = arith.mulf %42, %7 : vector<8x324xf32>
    %44 = vector.broadcast %2 : f32 to vector<8x324xf32>
    %45 = arith.mulf %44, %43 : vector<8x324xf32>
    %46 = arith.addf %5, %45 : vector<8x324xf32>
    %47 = vector.broadcast %1 : f32 to vector<8x324xf32>
    %48 = arith.mulf %47, %43 : vector<8x324xf32>
    %49 = arith.addf %5, %48 : vector<8x324xf32>
    %50 = tpu.concatenate %12, %49, %12 in 1 : vector<8x38xf32>, vector<8x324xf32>, vector<8x38xf32> -> vector<8x400xf32>
    %51 = vector.extract_strided_slice %50 {offsets = [0, 0], sizes = [8, 362], strides = [1, 1]} : vector<8x400xf32> to vector<8x362xf32>
    %52 = vector.extract_strided_slice %50 {offsets = [0, 1], sizes = [8, 362], strides = [1, 1]} : vector<8x400xf32> to vector<8x362xf32>
    %53 = vector.extract_strided_slice %50 {offsets = [0, 2], sizes = [8, 362], strides = [1, 1]} : vector<8x400xf32> to vector<8x362xf32>
    %54 = vector.extract_strided_slice %50 {offsets = [0, 18], sizes = [8, 362], strides = [1, 1]} : vector<8x400xf32> to vector<8x362xf32>
    %55 = vector.extract_strided_slice %50 {offsets = [0, 19], sizes = [8, 362], strides = [1, 1]} : vector<8x400xf32> to vector<8x362xf32>
    %56 = vector.extract_strided_slice %50 {offsets = [0, 20], sizes = [8, 362], strides = [1, 1]} : vector<8x400xf32> to vector<8x362xf32>
    %57 = vector.extract_strided_slice %50 {offsets = [0, 36], sizes = [8, 362], strides = [1, 1]} : vector<8x400xf32> to vector<8x362xf32>
    %58 = vector.extract_strided_slice %50 {offsets = [0, 37], sizes = [8, 362], strides = [1, 1]} : vector<8x400xf32> to vector<8x362xf32>
    %59 = vector.extract_strided_slice %50 {offsets = [0, 38], sizes = [8, 362], strides = [1, 1]} : vector<8x400xf32> to vector<8x362xf32>
    %60 = tpu.concatenate %51, %52, %53, %54, %55, %56, %57, %58, %59 in 0 : vector<8x362xf32>, vector<8x362xf32>, vector<8x362xf32>, vector<8x362xf32>, vector<8x362xf32>, vector<8x362xf32>, vector<8x362xf32>, vector<8x362xf32>, vector<8x362xf32> -> vector<72x362xf32>
    %cst_21 = arith.constant dense<0.000000e+00> : vector<8x362xf32>
    %61 = tpu.matmul %8, %60, %cst_21 {dimension_numbers = #tpu.dot_dimension_numbers<[1], [0], [0], [1], [0, 0, 1, 1], [], []>} : vector<8x72xf32>, vector<72x362xf32>, vector<8x362xf32> -> vector<8x362xf32>
    %62 = vector.broadcast %9 : vector<8x1xf32> to vector<8x362xf32>
    %63 = arith.addf %61, %62 : vector<8x362xf32>
    %cst_22 = arith.constant 0.000000e+00 : f32
    %64 = vector.broadcast %cst_22 : f32 to vector<8x362xf32>
    %65 = arith.maximumf %63, %64 : vector<8x362xf32>
    %66 = arith.mulf %65, %6 : vector<8x362xf32>
    %67 = vector.extract_strided_slice %66 {offsets = [0, 0], sizes = [8, 324], strides = [1, 1]} : vector<8x362xf32> to vector<8x324xf32>
    %68 = vector.extract_strided_slice %66 {offsets = [0, 1], sizes = [8, 324], strides = [1, 1]} : vector<8x362xf32> to vector<8x324xf32>
    %69 = vector.extract_strided_slice %66 {offsets = [0, 2], sizes = [8, 324], strides = [1, 1]} : vector<8x362xf32> to vector<8x324xf32>
    %70 = vector.extract_strided_slice %66 {offsets = [0, 18], sizes = [8, 324], strides = [1, 1]} : vector<8x362xf32> to vector<8x324xf32>
    %71 = vector.extract_strided_slice %66 {offsets = [0, 19], sizes = [8, 324], strides = [1, 1]} : vector<8x362xf32> to vector<8x324xf32>
    %72 = vector.extract_strided_slice %66 {offsets = [0, 20], sizes = [8, 324], strides = [1, 1]} : vector<8x362xf32> to vector<8x324xf32>
    %73 = vector.extract_strided_slice %66 {offsets = [0, 36], sizes = [8, 324], strides = [1, 1]} : vector<8x362xf32> to vector<8x324xf32>
    %74 = vector.extract_strided_slice %66 {offsets = [0, 37], sizes = [8, 324], strides = [1, 1]} : vector<8x362xf32> to vector<8x324xf32>
    %75 = vector.extract_strided_slice %66 {offsets = [0, 38], sizes = [8, 324], strides = [1, 1]} : vector<8x362xf32> to vector<8x324xf32>
    %76 = tpu.concatenate %67, %68, %69, %70, %71, %72, %73, %74, %75 in 0 : vector<8x324xf32>, vector<8x324xf32>, vector<8x324xf32>, vector<8x324xf32>, vector<8x324xf32>, vector<8x324xf32>, vector<8x324xf32>, vector<8x324xf32>, vector<8x324xf32> -> vector<72x324xf32>
    %cst_23 = arith.constant dense<0.000000e+00> : vector<8x324xf32>
    %77 = tpu.matmul %10, %76, %cst_23 {dimension_numbers = #tpu.dot_dimension_numbers<[1], [0], [0], [1], [0, 0, 1, 1], [], []>} : vector<8x72xf32>, vector<72x324xf32>, vector<8x324xf32> -> vector<8x324xf32>
    %78 = vector.broadcast %11 : vector<8x1xf32> to vector<8x324xf32>
    %79 = arith.addf %77, %78 : vector<8x324xf32>
    %80 = arith.mulf %79, %7 : vector<8x324xf32>
    %81 = vector.broadcast %3 : f32 to vector<8x324xf32>
    %82 = arith.mulf %81, %80 : vector<8x324xf32>
    %83 = arith.addf %46, %82 : vector<8x324xf32>
    %84 = vector.broadcast %1 : f32 to vector<8x324xf32>
    %85 = arith.mulf %84, %80 : vector<8x324xf32>
    %86 = arith.addf %5, %85 : vector<8x324xf32>
    %87 = tpu.concatenate %12, %86, %12 in 1 : vector<8x38xf32>, vector<8x324xf32>, vector<8x38xf32> -> vector<8x400xf32>
    %88 = vector.extract_strided_slice %87 {offsets = [0, 0], sizes = [8, 362], strides = [1, 1]} : vector<8x400xf32> to vector<8x362xf32>
    %89 = vector.extract_strided_slice %87 {offsets = [0, 1], sizes = [8, 362], strides = [1, 1]} : vector<8x400xf32> to vector<8x362xf32>
    %90 = vector.extract_strided_slice %87 {offsets = [0, 2], sizes = [8, 362], strides = [1, 1]} : vector<8x400xf32> to vector<8x362xf32>
    %91 = vector.extract_strided_slice %87 {offsets = [0, 18], sizes = [8, 362], strides = [1, 1]} : vector<8x400xf32> to vector<8x362xf32>
    %92 = vector.extract_strided_slice %87 {offsets = [0, 19], sizes = [8, 362], strides = [1, 1]} : vector<8x400xf32> to vector<8x362xf32>
    %93 = vector.extract_strided_slice %87 {offsets = [0, 20], sizes = [8, 362], strides = [1, 1]} : vector<8x400xf32> to vector<8x362xf32>
    %94 = vector.extract_strided_slice %87 {offsets = [0, 36], sizes = [8, 362], strides = [1, 1]} : vector<8x400xf32> to vector<8x362xf32>
    %95 = vector.extract_strided_slice %87 {offsets = [0, 37], sizes = [8, 362], strides = [1, 1]} : vector<8x400xf32> to vector<8x362xf32>
    %96 = vector.extract_strided_slice %87 {offsets = [0, 38], sizes = [8, 362], strides = [1, 1]} : vector<8x400xf32> to vector<8x362xf32>
    %97 = tpu.concatenate %88, %89, %90, %91, %92, %93, %94, %95, %96 in 0 : vector<8x362xf32>, vector<8x362xf32>, vector<8x362xf32>, vector<8x362xf32>, vector<8x362xf32>, vector<8x362xf32>, vector<8x362xf32>, vector<8x362xf32>, vector<8x362xf32> -> vector<72x362xf32>
    %cst_24 = arith.constant dense<0.000000e+00> : vector<8x362xf32>
    %98 = tpu.matmul %8, %97, %cst_24 {dimension_numbers = #tpu.dot_dimension_numbers<[1], [0], [0], [1], [0, 0, 1, 1], [], []>} : vector<8x72xf32>, vector<72x362xf32>, vector<8x362xf32> -> vector<8x362xf32>
    %99 = vector.broadcast %9 : vector<8x1xf32> to vector<8x362xf32>
    %100 = arith.addf %98, %99 : vector<8x362xf32>
    %cst_25 = arith.constant 0.000000e+00 : f32
    %101 = vector.broadcast %cst_25 : f32 to vector<8x362xf32>
    %102 = arith.maximumf %100, %101 : vector<8x362xf32>
    %103 = arith.mulf %102, %6 : vector<8x362xf32>
    %104 = vector.extract_strided_slice %103 {offsets = [0, 0], sizes = [8, 324], strides = [1, 1]} : vector<8x362xf32> to vector<8x324xf32>
    %105 = vector.extract_strided_slice %103 {offsets = [0, 1], sizes = [8, 324], strides = [1, 1]} : vector<8x362xf32> to vector<8x324xf32>
    %106 = vector.extract_strided_slice %103 {offsets = [0, 2], sizes = [8, 324], strides = [1, 1]} : vector<8x362xf32> to vector<8x324xf32>
    %107 = vector.extract_strided_slice %103 {offsets = [0, 18], sizes = [8, 324], strides = [1, 1]} : vector<8x362xf32> to vector<8x324xf32>
    %108 = vector.extract_strided_slice %103 {offsets = [0, 19], sizes = [8, 324], strides = [1, 1]} : vector<8x362xf32> to vector<8x324xf32>
    %109 = vector.extract_strided_slice %103 {offsets = [0, 20], sizes = [8, 324], strides = [1, 1]} : vector<8x362xf32> to vector<8x324xf32>
    %110 = vector.extract_strided_slice %103 {offsets = [0, 36], sizes = [8, 324], strides = [1, 1]} : vector<8x362xf32> to vector<8x324xf32>
    %111 = vector.extract_strided_slice %103 {offsets = [0, 37], sizes = [8, 324], strides = [1, 1]} : vector<8x362xf32> to vector<8x324xf32>
    %112 = vector.extract_strided_slice %103 {offsets = [0, 38], sizes = [8, 324], strides = [1, 1]} : vector<8x362xf32> to vector<8x324xf32>
    %113 = tpu.concatenate %104, %105, %106, %107, %108, %109, %110, %111, %112 in 0 : vector<8x324xf32>, vector<8x324xf32>, vector<8x324xf32>, vector<8x324xf32>, vector<8x324xf32>, vector<8x324xf32>, vector<8x324xf32>, vector<8x324xf32>, vector<8x324xf32> -> vector<72x324xf32>
    %cst_26 = arith.constant dense<0.000000e+00> : vector<8x324xf32>
    %114 = tpu.matmul %10, %113, %cst_26 {dimension_numbers = #tpu.dot_dimension_numbers<[1], [0], [0], [1], [0, 0, 1, 1], [], []>} : vector<8x72xf32>, vector<72x324xf32>, vector<8x324xf32> -> vector<8x324xf32>
    %115 = vector.broadcast %11 : vector<8x1xf32> to vector<8x324xf32>
    %116 = arith.addf %114, %115 : vector<8x324xf32>
    %117 = arith.mulf %116, %7 : vector<8x324xf32>
    %118 = vector.broadcast %3 : f32 to vector<8x324xf32>
    %119 = arith.mulf %118, %117 : vector<8x324xf32>
    %120 = arith.addf %83, %119 : vector<8x324xf32>
    %121 = vector.broadcast %0 : f32 to vector<8x324xf32>
    %122 = arith.mulf %121, %117 : vector<8x324xf32>
    %123 = arith.addf %5, %122 : vector<8x324xf32>
    %124 = tpu.concatenate %12, %123, %12 in 1 : vector<8x38xf32>, vector<8x324xf32>, vector<8x38xf32> -> vector<8x400xf32>
    %125 = vector.extract_strided_slice %124 {offsets = [0, 0], sizes = [8, 362], strides = [1, 1]} : vector<8x400xf32> to vector<8x362xf32>
    %126 = vector.extract_strided_slice %124 {offsets = [0, 1], sizes = [8, 362], strides = [1, 1]} : vector<8x400xf32> to vector<8x362xf32>
    %127 = vector.extract_strided_slice %124 {offsets = [0, 2], sizes = [8, 362], strides = [1, 1]} : vector<8x400xf32> to vector<8x362xf32>
    %128 = vector.extract_strided_slice %124 {offsets = [0, 18], sizes = [8, 362], strides = [1, 1]} : vector<8x400xf32> to vector<8x362xf32>
    %129 = vector.extract_strided_slice %124 {offsets = [0, 19], sizes = [8, 362], strides = [1, 1]} : vector<8x400xf32> to vector<8x362xf32>
    %130 = vector.extract_strided_slice %124 {offsets = [0, 20], sizes = [8, 362], strides = [1, 1]} : vector<8x400xf32> to vector<8x362xf32>
    %131 = vector.extract_strided_slice %124 {offsets = [0, 36], sizes = [8, 362], strides = [1, 1]} : vector<8x400xf32> to vector<8x362xf32>
    %132 = vector.extract_strided_slice %124 {offsets = [0, 37], sizes = [8, 362], strides = [1, 1]} : vector<8x400xf32> to vector<8x362xf32>
    %133 = vector.extract_strided_slice %124 {offsets = [0, 38], sizes = [8, 362], strides = [1, 1]} : vector<8x400xf32> to vector<8x362xf32>
    %134 = tpu.concatenate %125, %126, %127, %128, %129, %130, %131, %132, %133 in 0 : vector<8x362xf32>, vector<8x362xf32>, vector<8x362xf32>, vector<8x362xf32>, vector<8x362xf32>, vector<8x362xf32>, vector<8x362xf32>, vector<8x362xf32>, vector<8x362xf32> -> vector<72x362xf32>
    %cst_27 = arith.constant dense<0.000000e+00> : vector<8x362xf32>
    %135 = tpu.matmul %8, %134, %cst_27 {dimension_numbers = #tpu.dot_dimension_numbers<[1], [0], [0], [1], [0, 0, 1, 1], [], []>} : vector<8x72xf32>, vector<72x362xf32>, vector<8x362xf32> -> vector<8x362xf32>
    %136 = vector.broadcast %9 : vector<8x1xf32> to vector<8x362xf32>
    %137 = arith.addf %135, %136 : vector<8x362xf32>
    %cst_28 = arith.constant 0.000000e+00 : f32
    %138 = vector.broadcast %cst_28 : f32 to vector<8x362xf32>
    %139 = arith.maximumf %137, %138 : vector<8x362xf32>
    %140 = arith.mulf %139, %6 : vector<8x362xf32>
    %141 = vector.extract_strided_slice %140 {offsets = [0, 0], sizes = [8, 324], strides = [1, 1]} : vector<8x362xf32> to vector<8x324xf32>
    %142 = vector.extract_strided_slice %140 {offsets = [0, 1], sizes = [8, 324], strides = [1, 1]} : vector<8x362xf32> to vector<8x324xf32>
    %143 = vector.extract_strided_slice %140 {offsets = [0, 2], sizes = [8, 324], strides = [1, 1]} : vector<8x362xf32> to vector<8x324xf32>
    %144 = vector.extract_strided_slice %140 {offsets = [0, 18], sizes = [8, 324], strides = [1, 1]} : vector<8x362xf32> to vector<8x324xf32>
    %145 = vector.extract_strided_slice %140 {offsets = [0, 19], sizes = [8, 324], strides = [1, 1]} : vector<8x362xf32> to vector<8x324xf32>
    %146 = vector.extract_strided_slice %140 {offsets = [0, 20], sizes = [8, 324], strides = [1, 1]} : vector<8x362xf32> to vector<8x324xf32>
    %147 = vector.extract_strided_slice %140 {offsets = [0, 36], sizes = [8, 324], strides = [1, 1]} : vector<8x362xf32> to vector<8x324xf32>
    %148 = vector.extract_strided_slice %140 {offsets = [0, 37], sizes = [8, 324], strides = [1, 1]} : vector<8x362xf32> to vector<8x324xf32>
    %149 = vector.extract_strided_slice %140 {offsets = [0, 38], sizes = [8, 324], strides = [1, 1]} : vector<8x362xf32> to vector<8x324xf32>
    %150 = tpu.concatenate %141, %142, %143, %144, %145, %146, %147, %148, %149 in 0 : vector<8x324xf32>, vector<8x324xf32>, vector<8x324xf32>, vector<8x324xf32>, vector<8x324xf32>, vector<8x324xf32>, vector<8x324xf32>, vector<8x324xf32>, vector<8x324xf32> -> vector<72x324xf32>
    %cst_29 = arith.constant dense<0.000000e+00> : vector<8x324xf32>
    %151 = tpu.matmul %10, %150, %cst_29 {dimension_numbers = #tpu.dot_dimension_numbers<[1], [0], [0], [1], [0, 0, 1, 1], [], []>} : vector<8x72xf32>, vector<72x324xf32>, vector<8x324xf32> -> vector<8x324xf32>
    %152 = vector.broadcast %11 : vector<8x1xf32> to vector<8x324xf32>
    %153 = arith.addf %151, %152 : vector<8x324xf32>
    %154 = arith.mulf %153, %7 : vector<8x324xf32>
    %155 = vector.broadcast %2 : f32 to vector<8x324xf32>
    %156 = arith.mulf %155, %154 : vector<8x324xf32>
    %157 = arith.addf %120, %156 : vector<8x324xf32>
    %c0_30 = arith.constant 0 : index
    %c0_31 = arith.constant 0 : index
    %c0_32 = arith.constant 0 : index
    %158 = vector.load %arg9[%c0_30, %c0_31, %c0_32] : memref<1x8x324xf32, #tpu.memory_space<vmem>>, vector<1x8x324xf32>
    %159 = vector.shape_cast %158 : vector<1x8x324xf32> to vector<8x324xf32>
    %160 = vector.shape_cast %157 : vector<8x324xf32> to vector<1x8x324xf32>
    tpu.vector_store %arg9[%c0_30, %c0_31, %c0_32], %160 {strides = array<i32>} : memref<1x8x324xf32, #tpu.memory_space<vmem>>, vector<1x8x324xf32>,
    return
  }
  func.func @transform_0(%arg0: i32) -> i32 {
    %c0_i32 = arith.constant 0 : i32
    %c0_i32_0 = arith.constant 0 : i32
    return %c0_i32 : i32
  }
  func.func @transform_1(%arg0: i32) -> (i32, i32, i32) {
    %c0_i32 = arith.constant 0 : i32
    %c0_i32_0 = arith.constant 0 : i32
    %c0_i32_1 = arith.constant 0 : i32
    return %arg0, %c0_i32, %c0_i32_0 : i32, i32, i32
  }
  func.func @transform_2(%arg0: i32) -> (i32, i32) {
    %c0_i32 = arith.constant 0 : i32
    %c0_i32_0 = arith.constant 0 : i32
    %c0_i32_1 = arith.constant 0 : i32
    return %c0_i32, %c0_i32_0 : i32, i32
  }
  func.func @transform_3(%arg0: i32) -> (i32, i32) {
    %c0_i32 = arith.constant 0 : i32
    %c0_i32_0 = arith.constant 0 : i32
    %c0_i32_1 = arith.constant 0 : i32
    return %c0_i32, %c0_i32_0 : i32, i32
  }
  func.func @transform_4(%arg0: i32) -> (i32, i32) {
    %c0_i32 = arith.constant 0 : i32
    %c0_i32_0 = arith.constant 0 : i32
    %c0_i32_1 = arith.constant 0 : i32
    return %c0_i32, %c0_i32_0 : i32, i32
  }
  func.func @transform_5(%arg0: i32) -> (i32, i32) {
    %c0_i32 = arith.constant 0 : i32
    %c0_i32_0 = arith.constant 0 : i32
    %c0_i32_1 = arith.constant 0 : i32
    return %c0_i32, %c0_i32_0 : i32, i32
  }
  func.func @transform_6(%arg0: i32) -> (i32, i32) {
    %c0_i32 = arith.constant 0 : i32
    %c0_i32_0 = arith.constant 0 : i32
    %c0_i32_1 = arith.constant 0 : i32
    return %c0_i32, %c0_i32_0 : i32, i32
  }
  func.func @transform_7(%arg0: i32) -> (i32, i32) {
    %c0_i32 = arith.constant 0 : i32
    %c0_i32_0 = arith.constant 0 : i32
    %c0_i32_1 = arith.constant 0 : i32
    return %c0_i32, %c0_i32_0 : i32, i32
  }
  func.func @transform_8(%arg0: i32) -> (i32, i32, i32) {
    %c0_i32 = arith.constant 0 : i32
    %c0_i32_0 = arith.constant 0 : i32
    %c0_i32_1 = arith.constant 0 : i32
    return %arg0, %c0_i32, %c0_i32_0 : i32, i32, i32
  }
}

</mosaic_0001>

<bundles_post_ra>
// kernel: ode_block_time_last_k_forward.1
= control target key start
LH: loop header
LB: loop body
LE: loop exit
PB: predicated region body
PF: predicated region fallthrough
CT: control target
= control target key end

     0   :  { %v2399_v2 = vmov 0.0   ;;  %s2400_s9 = smov 38   ;;  %s2401_s12 = smov 90   ;;  %vm56_vm0 = vcmask 310272   ;;  %vm63_vm1 = vcmask 867328   ;;  %vm2409_vm2 = vmmov 0   ;;  %s3459_s1 = inlined_call_operand.vmem [shape: f32[1,8,324], index: 1, kind: input, shape index: {}]   ;;  %s3460_s3 = inlined_call_operand.vmem [shape: f32[8,1], index: 3, kind: input, shape index: {}]   ;;  %s3461_s2 = inlined_call_operand.vmem [shape: f32[8,72], index: 2, kind: input, shape index: {}]   ;;  %s3462_s6 = inlined_call_operand.vmem [shape: f32[8,362], index: 6, kind: input, shape index: {}]   ;;  %s3463_s5 = inlined_call_operand.vmem [shape: f32[8,1], index: 5, kind: input, shape index: {}]   ;;  %s3464_s4 = inlined_call_operand.vmem [shape: f32[8,72], index: 4, kind: input, shape index: {}]   ;;  %s3465_s0 = inlined_call_operand.<no memory space> [shape: f32[1], index: 0, kind: input, shape index: {}]   ;;  %s3466_s7 = inlined_call_operand.vmem [shape: f32[8,324], index: 7, kind: input, shape index: {}]   ;;  %s3467_s8 = inlined_call_operand.vmem [shape: f32[1,8,324], index: 8, kind: output, shape index: {}]  }
   0x1   :  { %v2459_v0 = vld [vmem:[%s3459_s1 + $0x8] sm:$0xff]  ;;  %v2464_v1 = vld [vmem:[%s3459_s1] sm:$0xff]  ;;  %2207 = vmatprep.subr.mxu1 %v2399_v2  ;;  %246 = vmatprep.mubr.f32.mxu0 %v2399_v2  ;;  %v2475_v3 = vld [vmem:[%s3459_s1 + $0x10] sm:$0xff]  ;;  %s2402_s13 = smov 91   ;;  %s2403_s14 = smov 92   ;;  %v2410_v11 = vmov 0  }
   0x2   :  { %52 = vrot.lane.b32.xlu0 %v2459_v0, %s2400_s9  ;;  %50 = vrot.lane.b32.xlu1 %v2464_v1, %s2400_s9  ;;  %s2404_s15 = smov 110   ;;  %s2405_s16 = smov 108   ;;  %v44_v12 = vld [vmem:[%s3460_s3] sm:$0xff]  ;;  %vm166_vm3 = vcmask 736256   ;;  %vm151_vm4 = vcmask 744448   ;;  %vm136_vm5 = vcmask 752640   ;;  %vm2581_vm12 = vmneg %vm56_vm0 }
   0x3   :  { %s2406_s17 = smov 127   ;;  %s2407_s18 = smov 109   ;;  %2225 = vmatprep.mubr.msk.f32.mxu1 %vm2409_vm2, %v2399_v2  ;;  %2387 = vset.pattern.permute.xlu0 %v2410_v11  ;;  %vm121_vm6 = vcmask 883712   ;;  %vm109_vm7 = vcmask 891904   ;;  %vm97_vm8 = vcmask 900096   ;;  %vm85_vm9 = vcmask 1031168  }
   0x4   :  { %s2408_s19 = smov 126   ;;  %vm73_vm10 = vcmask 1039360   ;;  %v2575_v58 = vld [vmem:[%s3461_s2] sm:$0xff]  ;;  %vm178_vm11 = vcmask 588800   ;;  %s31_s21 = smul.f32 0.5, %s3465_s0  ;;  %vm2093_vm13 = vcmask 556032  }
   0x5   :  { %v2622_v11 = vld [vmem:[%s3462_s6] sm:$0xff]  ;;  %s32_s29 = smul.f32 0.16666667, %s3465_s0 }
   0x6   :  { %54 = vrot.lane.b32.xlu0 %v2475_v3, %s2400_s9  ;;  %164 = vrot.lane.b32.xlu1 %v2399_v2, %s2401_s12  ;;  %s33_s10 = smul.f32 0.33333334, %s3465_s0 }
   0xa   :  { %149 = vrot.lane.b32.xlu1 %v2399_v2, %s2402_s13 }
   0xe   :  { %134 = vrot.lane.b32.xlu1 %v2399_v2, %s2403_s14 }
  0x74   :  { %v53_v4 = vpop.permute.xlu0 %52  ;;  %v2485_v5 = vpop.permute.xlu1 %50 }
  0x75   :  { %v2489_v6 = vsel %vm56_vm0, %v2485_v5, %v53_v4  ;;  %v62_v7 = vsel %vm56_vm0, 0.0, %v2485_v5 }
  0x76   :  { %145 = vrot.lane.b32.xlu0 %v2489_v6, %s2402_s13  ;;  %160 = vrot.lane.b32.xlu1 %v2489_v6, %s2401_s12 }
  0x78   :  { %v55_v8 = vpop.permute.xlu0 %54  ;;  %v2535_v13 = vpop.permute.xlu1 %164 }
  0x79   :  { %v2506_v9 = vsel %vm56_vm0, %v53_v4, %v55_v8  ;;  %v2605_v4 = vld [vmem:[%s3462_s6 + $0x10] sm:$0xff] }
  0x7a   :  { %143 = vrot.lane.b32.xlu0 %v62_v7, %s2402_s13  ;;  %158 = vrot.lane.b32.xlu1 %v62_v7, %s2401_s12  ;;  %v64_v10 = vsel %vm63_vm1, %v2506_v9, 0.0 }
  0x7c   :  { %v2537_v14 = vpop.permute.xlu1 %149 }
  0x7e   :  { %130 = vrot.lane.b32.xlu0 %v2489_v6, %s2403_s14  ;;  %93 = vrot.lane.b32.xlu1 %v2489_v6, %s2404_s15 }
  0x80   :  { %v2539_v15 = vpop.permute.xlu1 %134 }
  0x82   :  { %128 = vrot.lane.b32.xlu0 %v62_v7, %s2403_s14  ;;  %91 = vrot.lane.b32.xlu1 %v62_v7, %s2404_s15 }
  0x86   :  { %117 = vrot.lane.b32.xlu0 %v2489_v6, %s2405_s16  ;;  %69 = vrot.lane.b32.xlu1 %v2489_v6, %s2406_s17 }
  0x8a   :  { %115 = vrot.lane.b32.xlu0 %v62_v7, %s2405_s16  ;;  %147 = vrot.lane.b32.xlu1 %v64_v10, %s2402_s13 }
  0x8e   :  { %105 = vrot.lane.b32.xlu0 %v2489_v6, %s2407_s18  ;;  %132 = vrot.lane.b32.xlu1 %v64_v10, %s2403_s14 }
  0x92   :  { %103 = vrot.lane.b32.xlu0 %v62_v7, %s2407_s18  ;;  %119 = vrot.lane.b32.xlu1 %v64_v10, %s2405_s16 }
  0x96   :  { %162 = vrot.lane.b32.xlu0 %v64_v10, %s2401_s12  ;;  %107 = vrot.lane.b32.xlu1 %v64_v10, %s2407_s18 }
  0x9a   :  { %81 = vrot.lane.b32.xlu0 %v2489_v6, %s2408_s19  ;;  %83 = vrot.lane.b32.xlu1 %v64_v10, %s2408_s19 }
  0x9e   :  { %79 = vrot.lane.b32.xlu0 %v62_v7, %s2408_s19  ;;  %67 = vrot.lane.b32.xlu1 %v62_v7, %s2406_s17 }
  0xa2   :  { %95 = vrot.lane.b32.xlu0 %v64_v10, %s2404_s15 }
  0xa6   :  { %71 = vrot.lane.b32.xlu0 %v64_v10, %s2406_s17 }
  0xaa   :  { %175 = vperm.xlu0 %2387, %v44_v12  }
  0xe8   :  { %v146_v16 = vpop.permute.xlu0 %145  ;;  %v161_v17 = vpop.permute.xlu1 %160 }
  0xec   :  { %v144_v18 = vpop.permute.xlu0 %143  ;;  %v159_v19 = vpop.permute.xlu1 %158 }
  0xed   :  { %v167_v35 = vsel %vm166_vm3, %v159_v19, %v161_v17  ;;  %v152_v40 = vsel %vm151_vm4, %v144_v18, %v146_v16  ;;  %v2647_v19 = vld [vmem:[%s3462_s6 + $0x8] sm:$0xff] }
  0xf0   :  { %v131_v20 = vpop.permute.xlu0 %130  ;;  %v94_v21 = vpop.permute.xlu1 %93 }
  0xf4   :  { %v129_v22 = vpop.permute.xlu0 %128  ;;  %v92_v23 = vpop.permute.xlu1 %91 }
  0xf5   :  { %v137_v43 = vsel %vm136_vm5, %v129_v22, %v131_v20  ;;  %v98_v52 = vsel %vm97_vm8, %v92_v23, %v94_v21 }
  0xf8   :  { %v118_v24 = vpop.permute.xlu0 %117  ;;  %v2541_v25 = vpop.permute.xlu1 %69 }
  0xfc   :  { %v116_v26 = vpop.permute.xlu0 %115  ;;  %v148_v27 = vpop.permute.xlu1 %147 }
  0xfd   :  { %v153_v37 = vsel %vm151_vm4, %v146_v16, %v148_v27  ;;  %v154_v38 = vsel %vm151_vm4, %v148_v27, %v2537_v14  ;;  %v122_v46 = vsel %vm121_vm6, %v116_v26, %v118_v24 }
 0x100   :  { %v106_v28 = vpop.permute.xlu0 %105  ;;  %v133_v29 = vpop.permute.xlu1 %132 }
 0x101   :  { %v138_v41 = vsel %vm136_vm5, %v131_v20, %v133_v29  ;;  %v139_v42 = vsel %vm136_vm5, %v133_v29, %v2539_v15 }
 0x104   :  { %v104_v30 = vpop.permute.xlu0 %103  ;;  %v120_v31 = vpop.permute.xlu1 %119 }
 0x105   :  { %v123_v44 = vsel %vm121_vm6, %v118_v24, %v120_v31  ;;  %v110_v49 = vsel %vm109_vm7, %v104_v30, %v106_v28 }
 0x108   :  { %v163_v32 = vpop.permute.xlu0 %162  ;;  %v108_v36 = vpop.permute.xlu1 %107 }
 0x109   :  { %v168_v33 = vsel %vm166_vm3, %v161_v17, %v163_v32  ;;  %v169_v34 = vsel %vm166_vm3, %v163_v32, %v2535_v13  ;;  %v111_v48 = vsel %vm109_vm7, %v106_v28, %v108_v36 }
 0x10a   :  { %196 = vmatprep.subr.mxu0 %v168_v33  ;;  %2208 = vmatpush3.msra.mxu1 %v169_v34 }
 0x10b   :  { %197 = vmatpush1.msra.mxu0 %v167_v35  ;;  %2209 = vmatprep.subr.mxu1 %v2399_v2 }
 0x10c   :  { %v82_v39 = vpop.permute.xlu0 %81  ;;  %198 = vmatprep.subr.mxu0 %v153_v37  ;;  %2210 = vmatpush3.msra.mxu1 %v154_v38  ;;  %v84_v47 = vpop.permute.xlu1 %83 }
 0x10d   :  { %199 = vmatpush1.msra.mxu0 %v152_v40  ;;  %2211 = vmatprep.subr.mxu1 %v2399_v2  ;;  %v87_v54 = vsel %vm85_vm9, %v82_v39, %v84_v47 }
 0x10e   :  { %200 = vmatprep.subr.mxu0 %v138_v41  ;;  %2212 = vmatpush3.msra.mxu1 %v139_v42 }
 0x10f   :  { %201 = vmatpush1.msra.mxu0 %v137_v43  ;;  %2213 = vmatprep.subr.mxu1 %v2399_v2 }
 0x110   :  { %v80_v45 = vpop.permute.xlu0 %79  ;;  %202 = vmatprep.subr.mxu0 %v123_v44  ;;  %2214 = vmatpush3.msra.mxu1 %v120_v31  ;;  %v68_v53 = vpop.permute.xlu1 %67 }
 0x111   :  { %203 = vmatpush1.msra.mxu0 %v122_v46  ;;  %2215 = vmatprep.subr.mxu1 %v2399_v2  ;;  %v86_v56 = vsel %vm85_vm9, %v80_v45, %v82_v39  ;;  %v74_v59 = vsel %vm73_vm10, %v68_v53, %v2541_v25 }
 0x112   :  { %204 = vmatprep.subr.mxu0 %v111_v48  ;;  %2216 = vmatpush3.msra.mxu1 %v108_v36 }
 0x113   :  { %205 = vmatpush1.msra.mxu0 %v110_v49  ;;  %2217 = vmatprep.subr.mxu1 %v2399_v2 }
 0x114   :  { %v96_v50 = vpop.permute.xlu0 %95 }
 0x115   :  { %2218 = vmatpush3.msra.mxu1 %v96_v50  ;;  %v99_v51 = vsel %vm97_vm8, %v94_v21, %v96_v50  ;;  %v46_v21 = vld [vmem:[%s3463_s5] sm:$0xff] }
 0x116   :  { %206 = vmatprep.subr.mxu0 %v99_v51  ;;  %2219 = vmatprep.subr.mxu1 %v2399_v2 }
 0x117   :  { %207 = vmatpush1.msra.mxu0 %v98_v52  ;;  %2220 = vmatpush3.msra.mxu1 %v84_v47 }
 0x118   :  { %v72_v55 = vpop.permute.xlu0 %71  ;;  %208 = vmatprep.subr.mxu0 %v87_v54  ;;  %2221 = vmatprep.subr.mxu1 %v2399_v2 }
 0x119   :  { %209 = vmatpush1.msra.mxu0 %v86_v56  ;;  %2222 = vmatpush3.msra.mxu1 %v72_v55  ;;  %v75_v57 = vsel %vm73_vm10, %v2541_v25, %v72_v55  ;;  %v2701_v56 = vld [vmem:[%s3464_s4] sm:$0xff] }
 0x11a   :  { %210 = vmatprep.subr.mxu0 %v75_v57  ;;  %2223 = vmatprep.subr.mxu1 %v2399_v2 }
 0x11b   :  { %211 = vmatpush1.msra.mxu0 %v74_v59  ;;  %2224 = vmatpush3.msk.msra.mxu1 %vm63_vm1, %v2506_v9 }
 0x11c   :  { %212 = vmatprep.subr.mxu0 %v2489_v6  ;;  %2226 = vmatmul.mubr.msk.f32.vlgmr.msra.gmra.mxu1 %vm178_vm11, %v2575_v58 }
 0x11d   :  { %2100 = vmatpush1.msk.msra.mxu0 %vm2581_vm12, %v2485_v5  ;;  %2228 = vmatprep.subr.mxu1 %v2399_v2 }
 0x11e   :  { %2101 = vmatmul.mubr.msk.f32.vlgmr.msra.gmra.mxu0 %vm178_vm11, %v2575_v58  ;;  %2246 = vmatprep.mubr.msk.f32.mxu1 %vm2409_vm2, %v2399_v2 }
 0x11f   :  { %492 = vmatprep.mubr.f32.mxu0 %v2399_v2 }
 0x125   :  { %v2599_v61 = vpop.permute.xlu0 %175 }
 0x1dc   :  { %v319_v62 = vpop.f32.mrf.mxu1 }
 0x1dd   :  { %v320_v63 = vadd.f32 %v319_v62, %v2599_v61 }
 0x1de   :  { %v2227_v5 = vpop.f32.mrf.mxu1  ;;  %v248_v8 = vpop.f32.mrf.mxu0 }
 0x1df   :  { %v325_v6 = vmax.f32 %v320_v63, 0.0  ;;  %v249_v9 = vadd.f32 %v248_v8, %v2599_v61  ;;  %v2727_v8 = vld [vmem:[%s3466_s7 + $0x10] sm:$0xff] }
 0x1e0   :  { %v250_v16 = vpop.f32.mrf.mxu0 }
 0x1e1   :  { %v2608_v7 = vmul.f32 %v325_v6, %v2605_v4  ;;  %v323_v10 = vmax.f32 %v249_v9, 0.0  ;;  %v251_v17 = vadd.f32 %v250_v16, %v2599_v61 }
 0x1e3   :  { %402 = vrot.lane.b32.xlu0 %v2608_v7, %s2402_s13  ;;  %413 = vrot.lane.b32.xlu1 %v2608_v7, %s2401_s12  ;;  %v2629_v12 = vmul.f32 %v323_v10, %v2622_v11  ;;  %v324_v18 = vmax.f32 %v251_v17, 0.0 }
 0x1e5   :  { %v2654_v20 = vmul.f32 %v324_v18, %v2647_v19 }
 0x1e7   :  { %380 = vrot.lane.b32.xlu0 %v2608_v7, %s2405_s16  ;;  %391 = vrot.lane.b32.xlu1 %v2608_v7, %s2403_s14 }
 0x1eb   :  { %358 = vrot.lane.b32.xlu0 %v2608_v7, %s2404_s15  ;;  %369 = vrot.lane.b32.xlu1 %v2608_v7, %s2407_s18 }
 0x1ef   :  { %347 = vrot.lane.b32.xlu1 %v2608_v7, %s2408_s19  ;;  %409 = vrot.lane.b32.xlu0 %v2629_v12, %s2401_s12 }
 0x1f3   :  { %398 = vrot.lane.b32.xlu1 %v2629_v12, %s2402_s13  ;;  %387 = vrot.lane.b32.xlu0 %v2629_v12, %s2403_s14 }
 0x1f7   :  { %376 = vrot.lane.b32.xlu1 %v2629_v12, %s2405_s16  ;;  %365 = vrot.lane.b32.xlu0 %v2629_v12, %s2407_s18 }
 0x1fb   :  { %354 = vrot.lane.b32.xlu1 %v2629_v12, %s2404_s15  ;;  %343 = vrot.lane.b32.xlu0 %v2629_v12, %s2408_s19 }
 0x1ff   :  { %411 = vrot.lane.b32.xlu1 %v2654_v20, %s2401_s12  ;;  %389 = vrot.lane.b32.xlu0 %v2654_v20, %s2403_s14 }
 0x203   :  { %400 = vrot.lane.b32.xlu1 %v2654_v20, %s2402_s13  ;;  %367 = vrot.lane.b32.xlu0 %v2654_v20, %s2407_s18 }
 0x207   :  { %378 = vrot.lane.b32.xlu1 %v2654_v20, %s2405_s16  ;;  %345 = vrot.lane.b32.xlu0 %v2654_v20, %s2408_s19 }
 0x20b   :  { %356 = vrot.lane.b32.xlu1 %v2654_v20, %s2404_s15  ;;  %336 = vrot.lane.b32.xlu0 %v2608_v7, %s2406_s17 }
 0x20f   :  { %334 = vrot.lane.b32.xlu1 %v2654_v20, %s2406_s17  ;;  %422 = vperm.xlu0 %2387, %v46_v21  }
 0x213   :  { %332 = vrot.lane.b32.xlu1 %v2629_v12, %s2406_s17 }
 0x255   :  { %v403_v22 = vpop.permute.xlu0 %402  ;;  %v414_v23 = vpop.permute.xlu1 %413 }
 0x256   :  { %2229 = vmatpush3.msra.mxu1 %v414_v23 }
 0x257   :  { %2230 = vmatprep.subr.mxu1 %v2399_v2 }
 0x258   :  { %2231 = vmatpush3.msra.mxu1 %v403_v22 }
 0x259   :  { %v381_v24 = vpop.permute.xlu0 %380  ;;  %2232 = vmatprep.subr.mxu1 %v2399_v2  ;;  %v392_v25 = vpop.permute.xlu1 %391 }
 0x25a   :  { %2233 = vmatpush3.msra.mxu1 %v392_v25 }
 0x25b   :  { %2234 = vmatprep.subr.mxu1 %v2399_v2 }
 0x25c   :  { %2235 = vmatpush3.msra.mxu1 %v381_v24 }
 0x25d   :  { %v359_v26 = vpop.permute.xlu0 %358  ;;  %2236 = vmatprep.subr.mxu1 %v2399_v2  ;;  %v370_v27 = vpop.permute.xlu1 %369 }
 0x25e   :  { %2237 = vmatpush3.msra.mxu1 %v370_v27 }
 0x25f   :  { %2238 = vmatprep.subr.mxu1 %v2399_v2 }
 0x260   :  { %2239 = vmatpush3.msra.mxu1 %v359_v26 }
 0x261   :  { %v410_v28 = vpop.permute.xlu0 %409  ;;  %2240 = vmatprep.subr.mxu1 %v2399_v2  ;;  %v348_v29 = vpop.permute.xlu1 %347 }
 0x262   :  { %2241 = vmatpush3.msra.mxu1 %v348_v29 }
 0x263   :  { %2242 = vmatprep.subr.mxu1 %v2399_v2 }
 0x265   :  { %v388_v30 = vpop.permute.xlu0 %387  ;;  %v399_v31 = vpop.permute.xlu1 %398 }
 0x269   :  { %v366_v32 = vpop.permute.xlu0 %365  ;;  %v377_v33 = vpop.permute.xlu1 %376 }
 0x26d   :  { %v344_v34 = vpop.permute.xlu0 %343  ;;  %v355_v35 = vpop.permute.xlu1 %354 }
 0x271   :  { %v390_v36 = vpop.permute.xlu0 %389  ;;  %v412_v37 = vpop.permute.xlu1 %411 }
 0x272   :  { %v416_v38 = vsel %vm166_vm3, %v412_v37, %v414_v23  ;;  %v415_v39 = vsel %vm166_vm3, %v410_v28, %v412_v37  ;;  %v394_v44 = vsel %vm136_vm5, %v390_v36, %v392_v25  ;;  %v393_v47 = vsel %vm136_vm5, %v388_v30, %v390_v36  ;;  %v2743_v23 = vld [vmem:[%s3466_s7] sm:$0xff] }
 0x273   :  { %442 = vmatprep.subr.mxu0 %v416_v38 }
 0x274   :  { %443 = vmatpush1.msra.mxu0 %v415_v39 }
 0x275   :  { %v368_v40 = vpop.permute.xlu0 %367  ;;  %v401_v41 = vpop.permute.xlu1 %400 }
 0x276   :  { %v405_v42 = vsel %vm151_vm4, %v401_v41, %v403_v22  ;;  %v404_v43 = vsel %vm151_vm4, %v399_v31, %v401_v41  ;;  %v372_v50 = vsel %vm109_vm7, %v368_v40, %v370_v27  ;;  %v371_v53 = vsel %vm109_vm7, %v366_v32, %v368_v40 }
 0x277   :  { %444 = vmatprep.subr.mxu0 %v405_v42 }
 0x278   :  { %445 = vmatpush1.msra.mxu0 %v404_v43 }
 0x279   :  { %v346_v45 = vpop.permute.xlu0 %345  ;;  %446 = vmatprep.subr.mxu0 %v394_v44  ;;  %v379_v46 = vpop.permute.xlu1 %378 }
 0x27a   :  { %447 = vmatpush1.msra.mxu0 %v393_v47  ;;  %v383_v48 = vsel %vm121_vm6, %v379_v46, %v381_v24  ;;  %v382_v49 = vsel %vm121_vm6, %v377_v33, %v379_v46  ;;  %v350_v57 = vsel %vm85_vm9, %v346_v45, %v348_v29  ;;  %v349_v62 = vsel %vm85_vm9, %v344_v34, %v346_v45  ;;  %v2748_v24 = vld [vmem:[%s3466_s7 + $0x8] sm:$0xff] }
 0x27b   :  { %448 = vmatprep.subr.mxu0 %v383_v48 }
 0x27c   :  { %449 = vmatpush1.msra.mxu0 %v382_v49 }
 0x27d   :  { %v337_v51 = vpop.permute.xlu0 %336  ;;  %450 = vmatprep.subr.mxu0 %v372_v50  ;;  %v357_v52 = vpop.permute.xlu1 %356 }
 0x27e   :  { %451 = vmatpush1.msra.mxu0 %v371_v53  ;;  %2243 = vmatpush3.msra.mxu1 %v337_v51  ;;  %v361_v54 = vsel %vm97_vm8, %v357_v52, %v359_v26  ;;  %v360_v55 = vsel %vm97_vm8, %v355_v35, %v357_v52 }
 0x27f   :  { %452 = vmatprep.subr.mxu0 %v361_v54  ;;  %2244 = vmatprep.subr.mxu1 %v2399_v2 }
 0x280   :  { %453 = vmatpush1.msra.mxu0 %v360_v55  ;;  %2245 = vmatpush3.msra.mxu1 %v2608_v7 }
 0x281   :  { %454 = vmatprep.subr.mxu0 %v350_v57  ;;  %2247 = vmatmul.mubr.msk.f32.vlgmr.msra.gmra.mxu1 %vm178_vm11, %v2701_v56  ;;  %v335_v59 = vpop.permute.xlu1 %334 }
 0x282   :  { %455 = vmatpush1.msra.mxu0 %v349_v62  ;;  %v339_v63 = vsel %vm73_vm10, %v335_v59, %v337_v51  ;;  %2249 = vmatprep.subr.mxu1 %v2399_v2 }
 0x283   :  { %456 = vmatprep.subr.mxu0 %v339_v63  ;;  %2267 = vmatprep.mubr.msk.f32.mxu1 %vm2409_vm2, %v2399_v2 }
 0x285   :  { %v333_v5 = vpop.permute.xlu1 %332 }
 0x286   :  { %v338_v6 = vsel %vm73_vm10, %v333_v5, %v335_v59 }
 0x287   :  { %457 = vmatpush1.msra.mxu0 %v338_v6 }
 0x288   :  { %458 = vmatprep.subr.mxu0 %v2654_v20 }
 0x289   :  { %459 = vmatpush1.msra.mxu0 %v2629_v12  ;;  %v2730_v12 = vstv %s31_s21 }
 0x28a   :  { %2104 = vmatmul.mubr.msk.f32.vlgmr.msra.gmra.mxu0 %vm178_vm11, %v2701_v56  ;;  %v2722_v7 = vpop.permute.xlu0 %422 }
 0x28b   :  { %759 = vmatprep.mubr.f32.mxu0 %v2399_v2 }
 0x341   :  { %v565_v9 = vpop.f32.mrf.mxu1 }
 0x342   :  { %v566_v10 = vadd.f32 %v565_v9, %v2722_v7 }
 0x343   :  { %v2248_v16 = vpop.f32.mrf.mxu1 }
 0x344   :  { %v2733_v17 = vmul.f32 %v566_v10, %v2727_v8 }
 0x346   :  { %v582_v18 = vmul.f32 %v2730_v12, %v2733_v17 }
 0x348   :  { %v585_v20 = vadd.f32 %v582_v18, %v2475_v3 }
 0x34a   :  { %v494_v21 = vpop.f32.mrf.mxu0  ;;  %593 = vrot.lane.b32.xlu0 %v585_v20, %s2400_s9 }
 0x34b   :  { %v495_v22 = vadd.f32 %v494_v21, %v2722_v7 }
 0x34c   :  { %v496_v25 = vpop.f32.mrf.mxu0 }
 0x34d   :  { %v497_v26 = vadd.f32 %v496_v25, %v2722_v7  ;;  %v2752_v3 = vmul.f32 %v495_v22, %v2743_v23 }
 0x34f   :  { %v2755_v27 = vmul.f32 %v497_v26, %v2748_v24  ;;  %v580_v29 = vmul.f32 %v2730_v12, %v2752_v3 }
 0x351   :  { %v581_v28 = vmul.f32 %v2730_v12, %v2755_v27  ;;  %v583_v31 = vadd.f32 %v580_v29, %v2464_v1 }
 0x353   :  { %v584_v30 = vadd.f32 %v581_v28, %v2459_v0 }
 0x355   :  { %591 = vrot.lane.b32.xlu1 %v584_v30, %s2400_s9 }
 0x359   :  { %589 = vrot.lane.b32.xlu1 %v583_v31, %s2400_s9 }
 0x3bc   :  { %v594_v1 = vpop.permute.xlu0 %593 }
 0x3c7   :  { %v592_v32 = vpop.permute.xlu1 %591 }
 0x3c8   :  { %v2791_v35 = vsel %vm56_vm0, %v592_v32, %v594_v1 }
 0x3c9   :  { %v601_v36 = vsel %vm63_vm1, %v2791_v35, 0.0 }
 0x3cb   :  { %v2765_v33 = vpop.permute.xlu1 %589 }
 0x3cc   :  { %v600_v34 = vsel %vm56_vm0, 0.0, %v2765_v33  ;;  %v2777_v0 = vsel %vm56_vm0, %v2765_v33, %v592_v32 }
 0x3cd   :  { %671 = vrot.lane.b32.xlu1 %v600_v34, %s2402_s13  ;;  %683 = vrot.lane.b32.xlu0 %v600_v34, %s2401_s12 }
 0x3d1   :  { %648 = vrot.lane.b32.xlu1 %v600_v34, %s2405_s16  ;;  %659 = vrot.lane.b32.xlu0 %v600_v34, %s2403_s14 }
 0x3d5   :  { %626 = vrot.lane.b32.xlu1 %v600_v34, %s2404_s15  ;;  %637 = vrot.lane.b32.xlu0 %v600_v34, %s2407_s18 }
 0x3d9   :  { %615 = vrot.lane.b32.xlu0 %v600_v34, %s2408_s19  ;;  %673 = vrot.lane.b32.xlu1 %v2777_v0, %s2402_s13 }
 0x3dd   :  { %650 = vrot.lane.b32.xlu1 %v2777_v0, %s2405_s16  ;;  %685 = vrot.lane.b32.xlu0 %v2777_v0, %s2401_s12 }
 0x3e1   :  { %628 = vrot.lane.b32.xlu1 %v2777_v0, %s2404_s15  ;;  %661 = vrot.lane.b32.xlu0 %v2777_v0, %s2403_s14 }
 0x3e5   :  { %606 = vrot.lane.b32.xlu1 %v2777_v0, %s2406_s17  ;;  %639 = vrot.lane.b32.xlu0 %v2777_v0, %s2407_s18 }
 0x3e9   :  { %687 = vrot.lane.b32.xlu1 %v601_v36, %s2401_s12  ;;  %617 = vrot.lane.b32.xlu0 %v2777_v0, %s2408_s19 }
 0x3ed   :  { %663 = vrot.lane.b32.xlu1 %v601_v36, %s2403_s14  ;;  %675 = vrot.lane.b32.xlu0 %v601_v36, %s2402_s13 }
 0x3f1   :  { %641 = vrot.lane.b32.xlu1 %v601_v36, %s2407_s18  ;;  %652 = vrot.lane.b32.xlu0 %v601_v36, %s2405_s16 }
 0x3f5   :  { %619 = vrot.lane.b32.xlu1 %v601_v36, %s2408_s19  ;;  %630 = vrot.lane.b32.xlu0 %v601_v36, %s2404_s15 }
 0x3f9   :  { %604 = vrot.lane.b32.xlu1 %v600_v34, %s2406_s17  ;;  %608 = vrot.lane.b32.xlu0 %v601_v36, %s2406_s17 }
 0x43f   :  { %v672_v37 = vpop.permute.xlu1 %671  ;;  %v684_v38 = vpop.permute.xlu0 %683 }
 0x443   :  { %v649_v39 = vpop.permute.xlu1 %648  ;;  %v660_v40 = vpop.permute.xlu0 %659 }
 0x447   :  { %v627_v41 = vpop.permute.xlu1 %626  ;;  %v638_v42 = vpop.permute.xlu0 %637 }
 0x44b   :  { %v616_v43 = vpop.permute.xlu0 %615  ;;  %v674_v44 = vpop.permute.xlu1 %673 }
 0x44c   :  { %v677_v5 = vsel %vm151_vm4, %v672_v37, %v674_v44 }
 0x44f   :  { %v651_v45 = vpop.permute.xlu1 %650  ;;  %v686_v46 = vpop.permute.xlu0 %685 }
 0x450   :  { %v689_v55 = vsel %vm166_vm3, %v684_v38, %v686_v46  ;;  %v654_v21 = vsel %vm121_vm6, %v649_v39, %v651_v45 }
 0x453   :  { %v629_v47 = vpop.permute.xlu1 %628  ;;  %v662_v48 = vpop.permute.xlu0 %661 }
 0x454   :  { %v665_v18 = vsel %vm136_vm5, %v660_v40, %v662_v48  ;;  %v632_v30 = vsel %vm97_vm8, %v627_v41, %v629_v47 }
 0x457   :  { %v607_v49 = vpop.permute.xlu1 %606  ;;  %v640_v50 = vpop.permute.xlu0 %639 }
 0x458   :  { %v643_v28 = vsel %vm109_vm7, %v638_v42, %v640_v50 }
 0x45b   :  { %v688_v51 = vpop.permute.xlu1 %687  ;;  %v618_v52 = vpop.permute.xlu0 %617 }
 0x45c   :  { %v690_v53 = vsel %vm166_vm3, %v686_v46, %v688_v51  ;;  %v691_v54 = vsel %vm166_vm3, %v688_v51, %v2535_v13  ;;  %v621_v1 = vsel %vm85_vm9, %v616_v43, %v618_v52 }
 0x45d   :  { %709 = vmatprep.subr.mxu0 %v690_v53  ;;  %2250 = vmatpush3.msra.mxu1 %v691_v54 }
 0x45e   :  { %710 = vmatpush1.msra.mxu0 %v689_v55  ;;  %2251 = vmatprep.subr.mxu1 %v2399_v2 }
 0x45f   :  { %v664_v57 = vpop.permute.xlu1 %663  ;;  %v676_v59 = vpop.permute.xlu0 %675 }
 0x460   :  { %v678_v62 = vsel %vm151_vm4, %v674_v44, %v676_v59  ;;  %v679_v63 = vsel %vm151_vm4, %v676_v59, %v2537_v14  ;;  %v666_v6 = vsel %vm136_vm5, %v662_v48, %v664_v57  ;;  %v667_v9 = vsel %vm136_vm5, %v664_v57, %v2539_v15 }
 0x461   :  { %711 = vmatprep.subr.mxu0 %v678_v62  ;;  %2252 = vmatpush3.msra.mxu1 %v679_v63 }
 0x462   :  { %712 = vmatpush1.msra.mxu0 %v677_v5  ;;  %2253 = vmatprep.subr.mxu1 %v2399_v2 }
 0x463   :  { %v642_v10 = vpop.permute.xlu1 %641  ;;  %713 = vmatprep.subr.mxu0 %v666_v6  ;;  %2254 = vmatpush3.msra.mxu1 %v667_v9  ;;  %v653_v16 = vpop.permute.xlu0 %652 }
 0x464   :  { %714 = vmatpush1.msra.mxu0 %v665_v18  ;;  %2255 = vmatprep.subr.mxu1 %v2399_v2  ;;  %v655_v20 = vsel %vm121_vm6, %v651_v45, %v653_v16  ;;  %v644_v22 = vsel %vm109_vm7, %v640_v50, %v642_v10 }
 0x465   :  { %715 = vmatprep.subr.mxu0 %v655_v20  ;;  %2256 = vmatpush3.msra.mxu1 %v653_v16 }
 0x466   :  { %716 = vmatpush1.msra.mxu0 %v654_v21  ;;  %2257 = vmatprep.subr.mxu1 %v2399_v2 }
 0x467   :  { %v620_v25 = vpop.permute.xlu1 %619  ;;  %717 = vmatprep.subr.mxu0 %v644_v22  ;;  %2258 = vmatpush3.msra.mxu1 %v642_v10  ;;  %v631_v26 = vpop.permute.xlu0 %630 }
 0x468   :  { %718 = vmatpush1.msra.mxu0 %v643_v28  ;;  %2259 = vmatprep.subr.mxu1 %v2399_v2  ;;  %v633_v29 = vsel %vm97_vm8, %v629_v47, %v631_v26  ;;  %v622_v31 = vsel %vm85_vm9, %v618_v52, %v620_v25 }
 0x469   :  { %719 = vmatprep.subr.mxu0 %v633_v29  ;;  %2260 = vmatpush3.msra.mxu1 %v631_v26 }
 0x46a   :  { %720 = vmatpush1.msra.mxu0 %v632_v30  ;;  %2261 = vmatprep.subr.mxu1 %v2399_v2 }
 0x46b   :  { %v605_v32 = vpop.permute.xlu1 %604  ;;  %721 = vmatprep.subr.mxu0 %v622_v31  ;;  %2262 = vmatpush3.msra.mxu1 %v620_v25  ;;  %v609_v34 = vpop.permute.xlu0 %608 }
 0x46c   :  { %v610_v36 = vsel %vm73_vm10, %v605_v32, %v607_v49  ;;  %722 = vmatpush1.msra.mxu0 %v621_v1  ;;  %2263 = vmatprep.subr.mxu1 %v2399_v2  ;;  %v611_v37 = vsel %vm73_vm10, %v607_v49, %v609_v34 }
 0x46d   :  { %723 = vmatprep.subr.mxu0 %v611_v37  ;;  %2264 = vmatpush3.msra.mxu1 %v609_v34 }
 0x46e   :  { %724 = vmatpush1.msra.mxu0 %v610_v36  ;;  %2265 = vmatprep.subr.mxu1 %v2399_v2 }
 0x46f   :  { %725 = vmatprep.subr.mxu0 %v2777_v0  ;;  %2266 = vmatpush3.msk.msra.mxu1 %vm63_vm1, %v2791_v35 }
 0x470   :  { %2107 = vmatpush1.msk.msra.mxu0 %vm2581_vm12, %v2765_v33  ;;  %2268 = vmatmul.mubr.msk.f32.vlgmr.msra.gmra.mxu1 %vm178_vm11, %v2575_v58 }
 0x471   :  { %2108 = vmatmul.mubr.msk.f32.vlgmr.msra.gmra.mxu0 %vm178_vm11, %v2575_v58  ;;  %2270 = vmatprep.subr.mxu1 %v2399_v2 }
 0x472   :  { %2288 = vmatprep.mubr.msk.f32.mxu1 %vm2409_vm2, %v2399_v2  ;;  %997 = vmatprep.mubr.f32.mxu0 %v2399_v2 }
 0x530   :  { %v832_v0 = vpop.f32.mrf.mxu1 }
 0x531   :  { %v833_v35 = vadd.f32 %v832_v0, %v2599_v61  ;;  %v761_v40 = vpop.f32.mrf.mxu0 }
 0x532   :  { %v2269_v38 = vpop.f32.mrf.mxu1  ;;  %v762_v58 = vadd.f32 %v761_v40, %v2599_v61 }
 0x533   :  { %v838_v39 = vmax.f32 %v833_v35, 0.0  ;;  %v763_v42 = vpop.f32.mrf.mxu0 }
 0x534   :  { %v836_v41 = vmax.f32 %v762_v58, 0.0  ;;  %v764_v43 = vadd.f32 %v763_v42, %v2599_v61 }
 0x535   :  { %v2856_v33 = vmul.f32 %v838_v39, %v2605_v4 }
 0x536   :  { %v2872_v4 = vmul.f32 %v836_v41, %v2622_v11  ;;  %v837_v11 = vmax.f32 %v764_v43, 0.0  ;;  %v2960_v41 = vstv %s33_s10 }
 0x537   :  { %915 = vrot.lane.b32.xlu0 %v2856_v33, %s2402_s13  ;;  %926 = vrot.lane.b32.xlu1 %v2856_v33, %s2401_s12 }
 0x538   :  { %v2892_v44 = vmul.f32 %v837_v11, %v2647_v19 }
 0x53b   :  { %893 = vrot.lane.b32.xlu0 %v2856_v33, %s2405_s16  ;;  %904 = vrot.lane.b32.xlu1 %v2856_v33, %s2403_s14 }
 0x53f   :  { %871 = vrot.lane.b32.xlu0 %v2856_v33, %s2404_s15  ;;  %882 = vrot.lane.b32.xlu1 %v2856_v33, %s2407_s18 }
 0x543   :  { %860 = vrot.lane.b32.xlu1 %v2856_v33, %s2408_s19  ;;  %922 = vrot.lane.b32.xlu0 %v2872_v4, %s2401_s12 }
 0x547   :  { %911 = vrot.lane.b32.xlu1 %v2872_v4, %s2402_s13  ;;  %900 = vrot.lane.b32.xlu0 %v2872_v4, %s2403_s14 }
 0x54b   :  { %889 = vrot.lane.b32.xlu1 %v2872_v4, %s2405_s16  ;;  %878 = vrot.lane.b32.xlu0 %v2872_v4, %s2407_s18 }
 0x54f   :  { %867 = vrot.lane.b32.xlu1 %v2872_v4, %s2404_s15  ;;  %856 = vrot.lane.b32.xlu0 %v2872_v4, %s2408_s19 }
 0x553   :  { %913 = vrot.lane.b32.xlu1 %v2892_v44, %s2402_s13  ;;  %924 = vrot.lane.b32.xlu0 %v2892_v44, %s2401_s12 }
 0x557   :  { %891 = vrot.lane.b32.xlu1 %v2892_v44, %s2405_s16  ;;  %902 = vrot.lane.b32.xlu0 %v2892_v44, %s2403_s14 }
 0x55b   :  { %869 = vrot.lane.b32.xlu1 %v2892_v44, %s2404_s15  ;;  %880 = vrot.lane.b32.xlu0 %v2892_v44, %s2407_s18 }
 0x55f   :  { %847 = vrot.lane.b32.xlu1 %v2892_v44, %s2406_s17  ;;  %858 = vrot.lane.b32.xlu0 %v2892_v44, %s2408_s19 }
 0x563   :  { %845 = vrot.lane.b32.xlu1 %v2872_v4, %s2406_s17  ;;  %849 = vrot.lane.b32.xlu0 %v2856_v33, %s2406_s17 }
 0x5a9   :  { %v916_v19 = vpop.permute.xlu0 %915  ;;  %v927_v45 = vpop.permute.xlu1 %926 }
 0x5aa   :  { %2271 = vmatpush3.msra.mxu1 %v927_v45 }
 0x5ab   :  { %2272 = vmatprep.subr.mxu1 %v2399_v2 }
 0x5ac   :  { %2273 = vmatpush3.msra.mxu1 %v916_v19 }
 0x5ad   :  { %v894_v46 = vpop.permute.xlu0 %893  ;;  %2274 = vmatprep.subr.mxu1 %v2399_v2  ;;  %v905_v47 = vpop.permute.xlu1 %904 }
 0x5ae   :  { %2275 = vmatpush3.msra.mxu1 %v905_v47 }
 0x5af   :  { %2276 = vmatprep.subr.mxu1 %v2399_v2 }
 0x5b0   :  { %2277 = vmatpush3.msra.mxu1 %v894_v46 }
 0x5b1   :  { %v872_v48 = vpop.permute.xlu0 %871  ;;  %2278 = vmatprep.subr.mxu1 %v2399_v2  ;;  %v883_v49 = vpop.permute.xlu1 %882 }
 0x5b2   :  { %2279 = vmatpush3.msra.mxu1 %v883_v49 }
 0x5b3   :  { %2280 = vmatprep.subr.mxu1 %v2399_v2 }
 0x5b4   :  { %2281 = vmatpush3.msra.mxu1 %v872_v48 }
 0x5b5   :  { %2282 = vmatprep.subr.mxu1 %v2399_v2  ;;  %v861_v50 = vpop.permute.xlu1 %860  ;;  %v923_v51 = vpop.permute.xlu0 %922 }
 0x5b6   :  { %2283 = vmatpush3.msra.mxu1 %v861_v50 }
 0x5b7   :  { %2284 = vmatprep.subr.mxu1 %v2399_v2 }
 0x5b9   :  { %v912_v52 = vpop.permute.xlu1 %911  ;;  %v901_v53 = vpop.permute.xlu0 %900 }
 0x5bd   :  { %v890_v54 = vpop.permute.xlu1 %889  ;;  %v879_v55 = vpop.permute.xlu0 %878 }
 0x5c1   :  { %v868_v57 = vpop.permute.xlu1 %867  ;;  %v857_v59 = vpop.permute.xlu0 %856 }
 0x5c5   :  { %v914_v62 = vpop.permute.xlu1 %913  ;;  %v925_v63 = vpop.permute.xlu0 %924 }
 0x5c6   :  { %v929_v5 = vsel %vm166_vm3, %v925_v63, %v927_v45  ;;  %v928_v6 = vsel %vm166_vm3, %v923_v51, %v925_v63  ;;  %v918_v9 = vsel %vm151_vm4, %v914_v62, %v916_v19  ;;  %v917_v18 = vsel %vm151_vm4, %v912_v52, %v914_v62  ;;  %v2969_v19 = vld [vmem:[%s3459_s1 + $0x10] sm:$0xff] }
 0x5c7   :  { %947 = vmatprep.subr.mxu0 %v929_v5 }
 0x5c8   :  { %948 = vmatpush1.msra.mxu0 %v928_v6 }
 0x5c9   :  { %v892_v10 = vpop.permute.xlu1 %891  ;;  %949 = vmatprep.subr.mxu0 %v918_v9  ;;  %v903_v16 = vpop.permute.xlu0 %902 }
 0x5ca   :  { %950 = vmatpush1.msra.mxu0 %v917_v18  ;;  %v907_v20 = vsel %vm136_vm5, %v903_v16, %v905_v47  ;;  %v906_v21 = vsel %vm136_vm5, %v901_v53, %v903_v16  ;;  %v896_v22 = vsel %vm121_vm6, %v892_v10, %v894_v46  ;;  %v895_v28 = vsel %vm121_vm6, %v890_v54, %v892_v10 }
 0x5cb   :  { %951 = vmatprep.subr.mxu0 %v907_v20 }
 0x5cc   :  { %952 = vmatpush1.msra.mxu0 %v906_v21 }
 0x5cd   :  { %v870_v25 = vpop.permute.xlu1 %869  ;;  %953 = vmatprep.subr.mxu0 %v896_v22  ;;  %v881_v26 = vpop.permute.xlu0 %880 }
 0x5ce   :  { %954 = vmatpush1.msra.mxu0 %v895_v28  ;;  %v885_v29 = vsel %vm109_vm7, %v881_v26, %v883_v49  ;;  %v884_v30 = vsel %vm109_vm7, %v879_v55, %v881_v26  ;;  %v874_v31 = vsel %vm97_vm8, %v870_v25, %v872_v48  ;;  %v873_v1 = vsel %vm97_vm8, %v868_v57, %v870_v25  ;;  %v2981_v49 = vld [vmem:[%s3459_s1] sm:$0xff] }
 0x5cf   :  { %955 = vmatprep.subr.mxu0 %v885_v29 }
 0x5d0   :  { %956 = vmatpush1.msra.mxu0 %v884_v30 }
 0x5d1   :  { %v848_v32 = vpop.permute.xlu1 %847  ;;  %957 = vmatprep.subr.mxu0 %v874_v31  ;;  %v859_v34 = vpop.permute.xlu0 %858 }
 0x5d2   :  { %958 = vmatpush1.msra.mxu0 %v873_v1  ;;  %v863_v36 = vsel %vm85_vm9, %v859_v34, %v861_v50  ;;  %v862_v37 = vsel %vm85_vm9, %v857_v59, %v859_v34 }
 0x5d3   :  { %959 = vmatprep.subr.mxu0 %v863_v36 }
 0x5d4   :  { %960 = vmatpush1.msra.mxu0 %v862_v37 }
 0x5d5   :  { %v846_v0 = vpop.permute.xlu1 %845  ;;  %v850_v35 = vpop.permute.xlu0 %849 }
 0x5d6   :  { %v851_v38 = vsel %vm73_vm10, %v846_v0, %v848_v32  ;;  %2285 = vmatpush3.msra.mxu1 %v850_v35  ;;  %v852_v39 = vsel %vm73_vm10, %v848_v32, %v850_v35 }
 0x5d7   :  { %961 = vmatprep.subr.mxu0 %v852_v39  ;;  %2286 = vmatprep.subr.mxu1 %v2399_v2 }
 0x5d8   :  { %962 = vmatpush1.msra.mxu0 %v851_v38  ;;  %2287 = vmatpush3.msra.mxu1 %v2856_v33  ;;  %v2952_v33 = vstv %s32_s29 }
 0x5d9   :  { %963 = vmatprep.subr.mxu0 %v2892_v44  ;;  %2289 = vmatmul.mubr.msk.f32.vlgmr.msra.gmra.mxu1 %vm178_vm11, %v2701_v56  ;;  %v575_v40 = vmul.f32 %v2952_v33, %v2733_v17  ;;  %v573_v43 = vmul.f32 %v2952_v33, %v2752_v3 }
 0x5da   :  { %964 = vmatpush1.msra.mxu0 %v2872_v4  ;;  %2291 = vmatprep.subr.mxu1 %v2399_v2 }
 0x5db   :  { %2111 = vmatmul.mubr.msk.f32.vlgmr.msra.gmra.mxu0 %vm178_vm11, %v2701_v56  ;;  %2309 = vmatprep.mubr.msk.f32.mxu1 %vm2409_vm2, %v2399_v2  ;;  %v578_v17 = vadd.f32 %v2969_v19, %v575_v40  ;;  %v576_v50 = vadd.f32 %v2981_v49, %v573_v43 }
 0x5dc   :  { %1263 = vmatprep.mubr.f32.mxu0 %v2399_v2 }
 0x699   :  { %v1070_v58 = vpop.f32.mrf.mxu1 }
 0x69a   :  { %v1071_v56 = vadd.f32 %v1070_v58, %v2722_v7 }
 0x69b   :  { %v999_v4 = vpop.f32.mrf.mxu0  ;;  %v2290_v42 = vpop.f32.mrf.mxu1 }
 0x69c   :  { %v1076_v11 = vmul.f32 %v1071_v56, %v2727_v8  ;;  %v1000_v44 = vadd.f32 %v999_v4, %v2722_v7  ;;  %v574_v8 = vmul.f32 %v2952_v33, %v2755_v27  ;;  %v2995_v27 = vld [vmem:[%s3459_s1 + $0x8] sm:$0xff] }
 0x69d   :  { %v1001_v45 = vpop.f32.mrf.mxu0 }
 0x69e   :  { %v1080_v46 = vmul.f32 %v2960_v41, %v1076_v11  ;;  %v1086_v47 = vmul.f32 %v1076_v11, %v2730_v12  ;;  %v1074_v48 = vmul.f32 %v1000_v44, %v2743_v23  ;;  %v1002_v3 = vadd.f32 %v1001_v45, %v2722_v7 }
 0x69f   :  { %v577_v55 = vadd.f32 %v2995_v27, %v574_v8 }
 0x6a0   :  { %v2984_v51 = vadd.f32 %v1080_v46, %v578_v17  ;;  %v1089_v52 = vadd.f32 %v2969_v19, %v1086_v47  ;;  %v1078_v53 = vmul.f32 %v2960_v41, %v1074_v48  ;;  %v1075_v23 = vmul.f32 %v1002_v3, %v2748_v24 }
 0x6a1   :  { %v1084_v62 = vmul.f32 %v1074_v48, %v2730_v12 }
 0x6a2   :  { %v2989_v54 = vadd.f32 %v1078_v53, %v576_v50  ;;  %1097 = vrot.lane.b32.xlu1 %v1089_v52, %s2400_s9  ;;  %v1079_v57 = vmul.f32 %v2960_v41, %v1075_v23  ;;  %v1085_v59 = vmul.f32 %v1075_v23, %v2730_v12 }
 0x6a3   :  { %v1087_v5 = vadd.f32 %v2981_v49, %v1084_v62 }
 0x6a4   :  { %v3001_v63 = vadd.f32 %v1079_v57, %v577_v55  ;;  %v1088_v24 = vadd.f32 %v2995_v27, %v1085_v59 }
 0x6a6   :  { %1095 = vrot.lane.b32.xlu0 %v1088_v24, %s2400_s9 }
 0x6aa   :  { %1093 = vrot.lane.b32.xlu0 %v1087_v5, %s2400_s9 }
 0x714   :  { %v1098_v16 = vpop.permute.xlu1 %1097 }
 0x718   :  { %v1096_v6 = vpop.permute.xlu0 %1095 }
 0x719   :  { %v3033_v18 = vsel %vm56_vm0, %v1096_v6, %v1098_v16 }
 0x71a   :  { %v1105_v20 = vsel %vm63_vm1, %v3033_v18, 0.0 }
 0x71c   :  { %v3007_v9 = vpop.permute.xlu0 %1093 }
 0x71d   :  { %v1104_v10 = vsel %vm56_vm0, 0.0, %v3007_v9  ;;  %v3019_v12 = vsel %vm56_vm0, %v3007_v9, %v1096_v6 }
 0x71e   :  { %1175 = vrot.lane.b32.xlu0 %v1104_v10, %s2402_s13  ;;  %1187 = vrot.lane.b32.xlu1 %v1104_v10, %s2401_s12 }
 0x722   :  { %1152 = vrot.lane.b32.xlu0 %v1104_v10, %s2405_s16  ;;  %1163 = vrot.lane.b32.xlu1 %v1104_v10, %s2403_s14 }
 0x726   :  { %1130 = vrot.lane.b32.xlu0 %v1104_v10, %s2404_s15  ;;  %1141 = vrot.lane.b32.xlu1 %v1104_v10, %s2407_s18 }
 0x72a   :  { %1119 = vrot.lane.b32.xlu1 %v1104_v10, %s2408_s19  ;;  %1177 = vrot.lane.b32.xlu0 %v3019_v12, %s2402_s13 }
 0x72e   :  { %1154 = vrot.lane.b32.xlu0 %v3019_v12, %s2405_s16  ;;  %1189 = vrot.lane.b32.xlu1 %v3019_v12, %s2401_s12 }
 0x732   :  { %1132 = vrot.lane.b32.xlu0 %v3019_v12, %s2404_s15  ;;  %1165 = vrot.lane.b32.xlu1 %v3019_v12, %s2403_s14 }
 0x736   :  { %1110 = vrot.lane.b32.xlu0 %v3019_v12, %s2406_s17  ;;  %1143 = vrot.lane.b32.xlu1 %v3019_v12, %s2407_s18 }
 0x73a   :  { %1191 = vrot.lane.b32.xlu0 %v1105_v20, %s2401_s12  ;;  %1121 = vrot.lane.b32.xlu1 %v3019_v12, %s2408_s19 }
 0x73e   :  { %1167 = vrot.lane.b32.xlu0 %v1105_v20, %s2403_s14  ;;  %1179 = vrot.lane.b32.xlu1 %v1105_v20, %s2402_s13 }
 0x742   :  { %1145 = vrot.lane.b32.xlu0 %v1105_v20, %s2407_s18  ;;  %1156 = vrot.lane.b32.xlu1 %v1105_v20, %s2405_s16 }
 0x746   :  { %1123 = vrot.lane.b32.xlu0 %v1105_v20, %s2408_s19  ;;  %1134 = vrot.lane.b32.xlu1 %v1105_v20, %s2404_s15 }
 0x74a   :  { %1108 = vrot.lane.b32.xlu0 %v1104_v10, %s2406_s17  ;;  %1112 = vrot.lane.b32.xlu1 %v1105_v20, %s2406_s17  ;;  %v3091_v10 = vld [vmem:[%s3461_s2] sm:$0xff]  ;;  %v3105_v20 = vld [vmem:[%s3462_s6 + $0x10] sm:$0xff] }
 0x790   :  { %v1176_v21 = vpop.permute.xlu0 %1175  ;;  %v1188_v22 = vpop.permute.xlu1 %1187 }
 0x794   :  { %v1153_v25 = vpop.permute.xlu0 %1152  ;;  %v1164_v26 = vpop.permute.xlu1 %1163 }
 0x798   :  { %v1131_v28 = vpop.permute.xlu0 %1130  ;;  %v1142_v29 = vpop.permute.xlu1 %1141 }
 0x79c   :  { %v1120_v30 = vpop.permute.xlu1 %1119  ;;  %v1178_v31 = vpop.permute.xlu0 %1177 }
 0x79d   :  { %v1181_v11 = vsel %vm151_vm4, %v1176_v21, %v1178_v31 }
 0x7a0   :  { %v1155_v32 = vpop.permute.xlu0 %1154  ;;  %v1190_v34 = vpop.permute.xlu1 %1189 }
 0x7a1   :  { %v1193_v58 = vsel %vm166_vm3, %v1188_v22, %v1190_v34  ;;  %v1158_v3 = vsel %vm121_vm6, %v1153_v25, %v1155_v32 }
 0x7a4   :  { %v1133_v1 = vpop.permute.xlu0 %1132  ;;  %v1166_v36 = vpop.permute.xlu1 %1165 }
 0x7a5   :  { %v1169_v45 = vsel %vm136_vm5, %v1164_v26, %v1166_v36  ;;  %v1136_v55 = vsel %vm97_vm8, %v1131_v28, %v1133_v1  ;;  %v3126_v28 = vld [vmem:[%s3462_s6] sm:$0xff] }
 0x7a8   :  { %v1111_v37 = vpop.permute.xlu0 %1110  ;;  %v1144_v0 = vpop.permute.xlu1 %1143 }
 0x7a9   :  { %v1147_v50 = vsel %vm109_vm7, %v1142_v29, %v1144_v0 }
 0x7ac   :  { %v1192_v35 = vpop.permute.xlu0 %1191  ;;  %v1122_v38 = vpop.permute.xlu1 %1121 }
 0x7ad   :  { %v1195_v39 = vsel %vm166_vm3, %v1192_v35, %v2535_v13  ;;  %v1194_v40 = vsel %vm166_vm3, %v1190_v34, %v1192_v35  ;;  %v1125_v59 = vsel %vm85_vm9, %v1120_v30, %v1122_v38  ;;  %v3151_v34 = vld [vmem:[%s3462_s6 + $0x8] sm:$0xff] }
 0x7ae   :  { %1213 = vmatprep.subr.mxu0 %v1194_v40  ;;  %2292 = vmatpush3.msra.mxu1 %v1195_v39 }
 0x7af   :  { %1214 = vmatpush1.msra.mxu0 %v1193_v58  ;;  %2293 = vmatprep.subr.mxu1 %v2399_v2 }
 0x7b0   :  { %v1168_v56 = vpop.permute.xlu0 %1167  ;;  %v1180_v4 = vpop.permute.xlu1 %1179 }
 0x7b1   :  { %v1183_v42 = vsel %vm151_vm4, %v1180_v4, %v2537_v14  ;;  %v1182_v43 = vsel %vm151_vm4, %v1178_v31, %v1180_v4  ;;  %v1171_v44 = vsel %vm136_vm5, %v1168_v56, %v2539_v15  ;;  %v1170_v17 = vsel %vm136_vm5, %v1166_v36, %v1168_v56 }
 0x7b2   :  { %1215 = vmatprep.subr.mxu0 %v1182_v43  ;;  %2294 = vmatpush3.msra.mxu1 %v1183_v42 }
 0x7b3   :  { %1216 = vmatpush1.msra.mxu0 %v1181_v11  ;;  %2295 = vmatprep.subr.mxu1 %v2399_v2 }
 0x7b4   :  { %v1146_v46 = vpop.permute.xlu0 %1145  ;;  %1217 = vmatprep.subr.mxu0 %v1170_v17  ;;  %2296 = vmatpush3.msra.mxu1 %v1171_v44  ;;  %v1157_v47 = vpop.permute.xlu1 %1156 }
 0x7b5   :  { %1218 = vmatpush1.msra.mxu0 %v1169_v45  ;;  %2297 = vmatprep.subr.mxu1 %v2399_v2  ;;  %v1159_v48 = vsel %vm121_vm6, %v1155_v32, %v1157_v47  ;;  %v1148_v8 = vsel %vm109_vm7, %v1144_v0, %v1146_v46 }
 0x7b6   :  { %1219 = vmatprep.subr.mxu0 %v1159_v48  ;;  %2298 = vmatpush3.msra.mxu1 %v1157_v47 }
 0x7b7   :  { %1220 = vmatpush1.msra.mxu0 %v1158_v3  ;;  %2299 = vmatprep.subr.mxu1 %v2399_v2 }
 0x7b8   :  { %v1124_v52 = vpop.permute.xlu0 %1123  ;;  %1221 = vmatprep.subr.mxu0 %v1148_v8  ;;  %2300 = vmatpush3.msra.mxu1 %v1146_v46  ;;  %v1135_v53 = vpop.permute.xlu1 %1134 }
 0x7b9   :  { %1222 = vmatpush1.msra.mxu0 %v1147_v50  ;;  %2301 = vmatprep.subr.mxu1 %v2399_v2  ;;  %v1137_v23 = vsel %vm97_vm8, %v1133_v1, %v1135_v53  ;;  %v1126_v57 = vsel %vm85_vm9, %v1122_v38, %v1124_v52 }
 0x7ba   :  { %1223 = vmatprep.subr.mxu0 %v1137_v23  ;;  %2302 = vmatpush3.msra.mxu1 %v1135_v53 }
 0x7bb   :  { %1224 = vmatpush1.msra.mxu0 %v1136_v55  ;;  %2303 = vmatprep.subr.mxu1 %v2399_v2 }
 0x7bc   :  { %v1109_v62 = vpop.permute.xlu0 %1108  ;;  %1225 = vmatprep.subr.mxu0 %v1126_v57  ;;  %2304 = vmatpush3.msra.mxu1 %v1124_v52  ;;  %v1113_v24 = vpop.permute.xlu1 %1112 }
 0x7bd   :  { %v1114_v5 = vsel %vm73_vm10, %v1109_v62, %v1111_v37  ;;  %1226 = vmatpush1.msra.mxu0 %v1125_v59  ;;  %2305 = vmatprep.subr.mxu1 %v2399_v2  ;;  %v1115_v6 = vsel %vm73_vm10, %v1111_v37, %v1113_v24 }
 0x7be   :  { %1227 = vmatprep.subr.mxu0 %v1115_v6  ;;  %2306 = vmatpush3.msra.mxu1 %v1113_v24 }
 0x7bf   :  { %1228 = vmatpush1.msra.mxu0 %v1114_v5  ;;  %2307 = vmatprep.subr.mxu1 %v2399_v2 }
 0x7c0   :  { %1229 = vmatprep.subr.mxu0 %v3019_v12  ;;  %2308 = vmatpush3.msk.msra.mxu1 %vm63_vm1, %v3033_v18 }
 0x7c1   :  { %2114 = vmatpush1.msk.msra.mxu0 %vm2581_vm12, %v3007_v9  ;;  %2310 = vmatmul.mubr.msk.f32.vlgmr.msra.gmra.mxu1 %vm178_vm11, %v3091_v10 }
 0x7c2   :  { %2115 = vmatmul.mubr.msk.f32.vlgmr.msra.gmra.mxu0 %vm178_vm11, %v3091_v10  ;;  %2312 = vmatprep.subr.mxu1 %v2399_v2 }
 0x7c3   :  { %2330 = vmatprep.mubr.msk.f32.mxu1 %vm2409_vm2, %v2399_v2  ;;  %1501 = vmatprep.mubr.f32.mxu0 %v2399_v2 }
 0x881   :  { %v1336_v12 = vpop.f32.mrf.mxu1 }
 0x882   :  { %v1337_v9 = vadd.f32 %v1336_v12, %v2599_v61  ;;  %v1265_v22 = vpop.f32.mrf.mxu0 }
 0x883   :  { %v2311_v16 = vpop.f32.mrf.mxu1  ;;  %v1266_v25 = vadd.f32 %v1265_v22, %v2599_v61 }
 0x884   :  { %v1342_v18 = vmax.f32 %v1337_v9, 0.0  ;;  %v1267_v30 = vpop.f32.mrf.mxu0 }
 0x885   :  { %v1340_v26 = vmax.f32 %v1266_v25, 0.0  ;;  %v1268_v31 = vadd.f32 %v1267_v30, %v2599_v61 }
 0x886   :  { %v3108_v21 = vmul.f32 %v3105_v20, %v1342_v18 }
 0x887   :  { %v3129_v29 = vmul.f32 %v3126_v28, %v1340_v26  ;;  %v1341_v32 = vmax.f32 %v1268_v31, 0.0  ;;  %v3205_v31 = vld [vmem:[%s3464_s4] sm:$0xff] }
 0x888   :  { %1419 = vrot.lane.b32.xlu1 %v3108_v21, %s2402_s13  ;;  %1430 = vrot.lane.b32.xlu0 %v3108_v21, %s2401_s12 }
 0x889   :  { %v3154_v1 = vmul.f32 %v3151_v34, %v1341_v32 }
 0x88c   :  { %1397 = vrot.lane.b32.xlu1 %v3108_v21, %s2405_s16  ;;  %1408 = vrot.lane.b32.xlu0 %v3108_v21, %s2403_s14 }
 0x890   :  { %1375 = vrot.lane.b32.xlu1 %v3108_v21, %s2404_s15  ;;  %1386 = vrot.lane.b32.xlu0 %v3108_v21, %s2407_s18 }
 0x894   :  { %1364 = vrot.lane.b32.xlu0 %v3108_v21, %s2408_s19  ;;  %1426 = vrot.lane.b32.xlu1 %v3129_v29, %s2401_s12 }
 0x898   :  { %1415 = vrot.lane.b32.xlu0 %v3129_v29, %s2402_s13  ;;  %1404 = vrot.lane.b32.xlu1 %v3129_v29, %s2403_s14 }
 0x89c   :  { %1393 = vrot.lane.b32.xlu0 %v3129_v29, %s2405_s16  ;;  %1382 = vrot.lane.b32.xlu1 %v3129_v29, %s2407_s18 }
 0x8a0   :  { %1371 = vrot.lane.b32.xlu0 %v3129_v29, %s2404_s15  ;;  %1360 = vrot.lane.b32.xlu1 %v3129_v29, %s2408_s19 }
 0x8a4   :  { %1417 = vrot.lane.b32.xlu0 %v3154_v1, %s2402_s13  ;;  %1428 = vrot.lane.b32.xlu1 %v3154_v1, %s2401_s12 }
 0x8a8   :  { %1395 = vrot.lane.b32.xlu0 %v3154_v1, %s2405_s16  ;;  %1406 = vrot.lane.b32.xlu1 %v3154_v1, %s2403_s14 }
 0x8ac   :  { %1373 = vrot.lane.b32.xlu0 %v3154_v1, %s2404_s15  ;;  %1384 = vrot.lane.b32.xlu1 %v3154_v1, %s2407_s18 }
 0x8b0   :  { %1351 = vrot.lane.b32.xlu0 %v3154_v1, %s2406_s17  ;;  %1362 = vrot.lane.b32.xlu1 %v3154_v1, %s2408_s19 }
 0x8b4   :  { %1349 = vrot.lane.b32.xlu0 %v3129_v29, %s2406_s17  ;;  %1353 = vrot.lane.b32.xlu1 %v3108_v21, %s2406_s17 }
 0x8fa   :  { %v1420_v36 = vpop.permute.xlu1 %1419  ;;  %v1431_v37 = vpop.permute.xlu0 %1430 }
 0x8fb   :  { %2313 = vmatpush3.msra.mxu1 %v1431_v37 }
 0x8fc   :  { %2314 = vmatprep.subr.mxu1 %v2399_v2 }
 0x8fd   :  { %2315 = vmatpush3.msra.mxu1 %v1420_v36 }
 0x8fe   :  { %v1398_v0 = vpop.permute.xlu1 %1397  ;;  %2316 = vmatprep.subr.mxu1 %v2399_v2  ;;  %v1409_v35 = vpop.permute.xlu0 %1408 }
 0x8ff   :  { %2317 = vmatpush3.msra.mxu1 %v1409_v35 }
 0x900   :  { %2318 = vmatprep.subr.mxu1 %v2399_v2 }
 0x901   :  { %2319 = vmatpush3.msra.mxu1 %v1398_v0 }
 0x902   :  { %v1376_v38 = vpop.permute.xlu1 %1375  ;;  %2320 = vmatprep.subr.mxu1 %v2399_v2  ;;  %v1387_v39 = vpop.permute.xlu0 %1386 }
 0x903   :  { %2321 = vmatpush3.msra.mxu1 %v1387_v39 }
 0x904   :  { %2322 = vmatprep.subr.mxu1 %v2399_v2 }
 0x905   :  { %2323 = vmatpush3.msra.mxu1 %v1376_v38 }
 0x906   :  { %2324 = vmatprep.subr.mxu1 %v2399_v2  ;;  %v1365_v40 = vpop.permute.xlu0 %1364  ;;  %v1427_v58 = vpop.permute.xlu1 %1426 }
 0x907   :  { %2325 = vmatpush3.msra.mxu1 %v1365_v40 }
 0x908   :  { %2326 = vmatprep.subr.mxu1 %v2399_v2 }
 0x90a   :  { %v1416_v56 = vpop.permute.xlu0 %1415  ;;  %v1405_v4 = vpop.permute.xlu1 %1404 }
 0x90e   :  { %v1394_v42 = vpop.permute.xlu0 %1393  ;;  %v1383_v43 = vpop.permute.xlu1 %1382 }
 0x912   :  { %v1372_v11 = vpop.permute.xlu0 %1371  ;;  %v1361_v44 = vpop.permute.xlu1 %1360 }
 0x916   :  { %v1418_v17 = vpop.permute.xlu0 %1417  ;;  %v1429_v45 = vpop.permute.xlu1 %1428 }
 0x917   :  { %v1432_v46 = vsel %vm166_vm3, %v1427_v58, %v1429_v45  ;;  %v1433_v47 = vsel %vm166_vm3, %v1429_v45, %v1431_v37  ;;  %v1422_v48 = vsel %vm151_vm4, %v1418_v17, %v1420_v36  ;;  %v1421_v3 = vsel %vm151_vm4, %v1416_v56, %v1418_v17  ;;  %v3231_v58 = vld [vmem:[%s3466_s7] sm:$0xff] }
 0x918   :  { %1451 = vmatprep.subr.mxu0 %v1433_v47 }
 0x919   :  { %1452 = vmatpush1.msra.mxu0 %v1432_v46 }
 0x91a   :  { %v1396_v8 = vpop.permute.xlu0 %1395  ;;  %1453 = vmatprep.subr.mxu0 %v1422_v48  ;;  %v1407_v50 = vpop.permute.xlu1 %1406 }
 0x91b   :  { %v1410_v52 = vsel %vm136_vm5, %v1405_v4, %v1407_v50  ;;  %1454 = vmatpush1.msra.mxu0 %v1421_v3  ;;  %v1411_v53 = vsel %vm136_vm5, %v1407_v50, %v1409_v35  ;;  %v1400_v23 = vsel %vm121_vm6, %v1396_v8, %v1398_v0  ;;  %v1399_v55 = vsel %vm121_vm6, %v1394_v42, %v1396_v8 }
 0x91c   :  { %1455 = vmatprep.subr.mxu0 %v1411_v53 }
 0x91d   :  { %1456 = vmatpush1.msra.mxu0 %v1410_v52 }
 0x91e   :  { %v1374_v57 = vpop.permute.xlu0 %1373  ;;  %1457 = vmatprep.subr.mxu0 %v1400_v23  ;;  %v1385_v59 = vpop.permute.xlu1 %1384 }
 0x91f   :  { %v1388_v62 = vsel %vm109_vm7, %v1383_v43, %v1385_v59  ;;  %1458 = vmatpush1.msra.mxu0 %v1399_v55  ;;  %v1389_v24 = vsel %vm109_vm7, %v1385_v59, %v1387_v39  ;;  %v1378_v5 = vsel %vm97_vm8, %v1374_v57, %v1376_v38  ;;  %v1377_v6 = vsel %vm97_vm8, %v1372_v11, %v1374_v57 }
 0x920   :  { %1459 = vmatprep.subr.mxu0 %v1389_v24 }
 0x921   :  { %1460 = vmatpush1.msra.mxu0 %v1388_v62 }
 0x922   :  { %v1352_v12 = vpop.permute.xlu0 %1351  ;;  %1461 = vmatprep.subr.mxu0 %v1378_v5  ;;  %v1363_v9 = vpop.permute.xlu1 %1362 }
 0x923   :  { %v1366_v16 = vsel %vm85_vm9, %v1361_v44, %v1363_v9  ;;  %1462 = vmatpush1.msra.mxu0 %v1377_v6  ;;  %v1367_v18 = vsel %vm85_vm9, %v1363_v9, %v1365_v40  ;;  %v3243_v44 = vld [vmem:[%s3466_s7 + $0x8] sm:$0xff] }
 0x924   :  { %1463 = vmatprep.subr.mxu0 %v1367_v18 }
 0x925   :  { %1464 = vmatpush1.msra.mxu0 %v1366_v16 }
 0x926   :  { %v1350_v22 = vpop.permute.xlu0 %1349  ;;  %v1354_v25 = vpop.permute.xlu1 %1353 }
 0x927   :  { %v1355_v26 = vsel %vm73_vm10, %v1350_v22, %v1352_v12  ;;  %2327 = vmatpush3.msra.mxu1 %v1354_v25  ;;  %v1356_v30 = vsel %vm73_vm10, %v1352_v12, %v1354_v25 }
 0x928   :  { %1465 = vmatprep.subr.mxu0 %v1356_v30  ;;  %2328 = vmatprep.subr.mxu1 %v2399_v2 }
 0x929   :  { %1466 = vmatpush1.msra.mxu0 %v1355_v26  ;;  %2329 = vmatpush3.msra.mxu1 %v3108_v21 }
 0x92a   :  { %1467 = vmatprep.subr.mxu0 %v3154_v1  ;;  %2331 = vmatmul.mubr.msk.f32.vlgmr.msra.gmra.mxu1 %vm178_vm11, %v3205_v31  ;;  %v1587_v1 = vstv %s3465_s0 }
 0x92b   :  { %1468 = vmatpush1.msra.mxu0 %v3129_v29  ;;  %2333 = vmatprep.subr.mxu1 %v2399_v2  ;;  %v3223_v29 = vld [vmem:[%s3466_s7 + $0x10] sm:$0xff] }
 0x92c   :  { %2118 = vmatmul.mubr.msk.f32.vlgmr.msra.gmra.mxu0 %vm178_vm11, %v3205_v31  ;;  %2351 = vmatprep.mubr.msk.f32.mxu1 %vm2409_vm2, %v2399_v2 }
 0x92d   :  { %1767 = vmatprep.mubr.f32.mxu0 %v2399_v2 }
 0x9ea   :  { %v1574_v21 = vpop.f32.mrf.mxu1 }
 0x9eb   :  { %v1575_v32 = vadd.f32 %v1574_v21, %v2722_v7 }
 0x9ec   :  { %v1503_v36 = vpop.f32.mrf.mxu0  ;;  %v2332_v37 = vpop.f32.mrf.mxu1 }
 0x9ed   :  { %v1580_v0 = vmul.f32 %v3223_v29, %v1575_v32  ;;  %v1504_v35 = vadd.f32 %v1503_v36, %v2722_v7 }
 0x9ee   :  { %v1505_v38 = vpop.f32.mrf.mxu0 }
 0x9ef   :  { %v1583_v39 = vmul.f32 %v1580_v0, %v2960_v41  ;;  %v1590_v40 = vmul.f32 %v1587_v1, %v1580_v0  ;;  %v1578_v56 = vmul.f32 %v3231_v58, %v1504_v35  ;;  %v1506_v4 = vadd.f32 %v1505_v38, %v2722_v7 }
 0x9f1   :  { %v3236_v42 = vadd.f32 %v1583_v39, %v2984_v51  ;;  %v1593_v43 = vadd.f32 %v2969_v19, %v1590_v40  ;;  %v1581_v11 = vmul.f32 %v1578_v56, %v2960_v41  ;;  %v1579_v17 = vmul.f32 %v3243_v44, %v1506_v4 }
 0x9f2   :  { %v1588_v47 = vmul.f32 %v1587_v1, %v1578_v56 }
 0x9f3   :  { %v3247_v45 = vadd.f32 %v1581_v11, %v2989_v54  ;;  %1601 = vrot.lane.b32.xlu0 %v1593_v43, %s2400_s9  ;;  %v1582_v46 = vmul.f32 %v1579_v17, %v2960_v41  ;;  %v1589_v51 = vmul.f32 %v1587_v1, %v1579_v17 }
 0x9f4   :  { %v1591_v3 = vadd.f32 %v2981_v49, %v1588_v47 }
 0x9f5   :  { %v3252_v19 = vadd.f32 %v1582_v46, %v3001_v63  ;;  %v1592_v48 = vadd.f32 %v2995_v27, %v1589_v51 }
 0x9f7   :  { %1599 = vrot.lane.b32.xlu1 %v1592_v48, %s2400_s9 }
 0x9fb   :  { %1597 = vrot.lane.b32.xlu1 %v1591_v3, %s2400_s9 }
 0xa65   :  { %v1602_v49 = vpop.permute.xlu0 %1601 }
 0xa69   :  { %v1600_v8 = vpop.permute.xlu1 %1599 }
 0xa6a   :  { %v3284_v27 = vsel %vm56_vm0, %v1600_v8, %v1602_v49 }
 0xa6b   :  { %v1609_v63 = vsel %vm63_vm1, %v3284_v27, 0.0 }
 0xa6d   :  { %v3258_v54 = vpop.permute.xlu1 %1597 }
 0xa6e   :  { %v1608_v50 = vsel %vm56_vm0, 0.0, %v3258_v54  ;;  %v3270_v41 = vsel %vm56_vm0, %v3258_v54, %v1600_v8 }
 0xa6f   :  { %1679 = vrot.lane.b32.xlu1 %v1608_v50, %s2402_s13  ;;  %1691 = vrot.lane.b32.xlu0 %v1608_v50, %s2401_s12 }
 0xa73   :  { %1656 = vrot.lane.b32.xlu1 %v1608_v50, %s2405_s16  ;;  %1667 = vrot.lane.b32.xlu0 %v1608_v50, %s2403_s14 }
 0xa77   :  { %1634 = vrot.lane.b32.xlu1 %v1608_v50, %s2404_s15  ;;  %1645 = vrot.lane.b32.xlu0 %v1608_v50, %s2407_s18 }
 0xa7b   :  { %1623 = vrot.lane.b32.xlu0 %v1608_v50, %s2408_s19  ;;  %1681 = vrot.lane.b32.xlu1 %v3270_v41, %s2402_s13 }
 0xa7f   :  { %1658 = vrot.lane.b32.xlu1 %v3270_v41, %s2405_s16  ;;  %1693 = vrot.lane.b32.xlu0 %v3270_v41, %s2401_s12 }
 0xa83   :  { %1636 = vrot.lane.b32.xlu1 %v3270_v41, %s2404_s15  ;;  %1669 = vrot.lane.b32.xlu0 %v3270_v41, %s2403_s14 }
 0xa87   :  { %1614 = vrot.lane.b32.xlu1 %v3270_v41, %s2406_s17  ;;  %1647 = vrot.lane.b32.xlu0 %v3270_v41, %s2407_s18 }
 0xa8b   :  { %1695 = vrot.lane.b32.xlu1 %v1609_v63, %s2401_s12  ;;  %1625 = vrot.lane.b32.xlu0 %v3270_v41, %s2408_s19 }
 0xa8f   :  { %1671 = vrot.lane.b32.xlu1 %v1609_v63, %s2403_s14  ;;  %1683 = vrot.lane.b32.xlu0 %v1609_v63, %s2402_s13 }
 0xa93   :  { %1649 = vrot.lane.b32.xlu1 %v1609_v63, %s2407_s18  ;;  %1660 = vrot.lane.b32.xlu0 %v1609_v63, %s2405_s16 }
 0xa97   :  { %1627 = vrot.lane.b32.xlu1 %v1609_v63, %s2408_s19  ;;  %1638 = vrot.lane.b32.xlu0 %v1609_v63, %s2404_s15 }
 0xa9b   :  { %1612 = vrot.lane.b32.xlu1 %v1608_v50, %s2406_s17  ;;  %1616 = vrot.lane.b32.xlu0 %v1609_v63, %s2406_s17 }
 0xae1   :  { %v1680_v52 = vpop.permute.xlu1 %1679  ;;  %v1692_v53 = vpop.permute.xlu0 %1691 }
 0xae5   :  { %v1657_v23 = vpop.permute.xlu1 %1656  ;;  %v1668_v55 = vpop.permute.xlu0 %1667 }
 0xae9   :  { %v1635_v57 = vpop.permute.xlu1 %1634  ;;  %v1646_v59 = vpop.permute.xlu0 %1645 }
 0xaed   :  { %v1624_v62 = vpop.permute.xlu0 %1623  ;;  %v1682_v24 = vpop.permute.xlu1 %1681 }
 0xaee   :  { %v1685_v0 = vsel %vm151_vm4, %v1680_v52, %v1682_v24 }
 0xaf1   :  { %v1659_v5 = vpop.permute.xlu1 %1658  ;;  %v1694_v6 = vpop.permute.xlu0 %1693 }
 0xaf2   :  { %v1697_v21 = vsel %vm166_vm3, %v1692_v53, %v1694_v6  ;;  %v1662_v56 = vsel %vm121_vm6, %v1657_v23, %v1659_v5 }
 0xaf5   :  { %v1637_v12 = vpop.permute.xlu1 %1636  ;;  %v1670_v9 = vpop.permute.xlu0 %1669 }
 0xaf6   :  { %v1673_v38 = vsel %vm136_vm5, %v1668_v55, %v1670_v9  ;;  %v1640_v46 = vsel %vm97_vm8, %v1635_v57, %v1637_v12 }
 0xaf9   :  { %v1615_v16 = vpop.permute.xlu1 %1614  ;;  %v1648_v18 = vpop.permute.xlu0 %1647 }
 0xafa   :  { %v1651_v4 = vsel %vm109_vm7, %v1646_v59, %v1648_v18 }
 0xafd   :  { %v1696_v22 = vpop.permute.xlu1 %1695  ;;  %v1626_v25 = vpop.permute.xlu0 %1625 }
 0xafe   :  { %v1699_v26 = vsel %vm166_vm3, %v1696_v22, %v2535_v13  ;;  %v1698_v30 = vsel %vm166_vm3, %v1694_v6, %v1696_v22  ;;  %v1629_v47 = vsel %vm85_vm9, %v1624_v62, %v1626_v25 }
 0xaff   :  { %1717 = vmatprep.subr.mxu0 %v1698_v30  ;;  %2334 = vmatpush3.msra.mxu1 %v1699_v26 }
 0xb00   :  { %1718 = vmatpush1.msra.mxu0 %v1697_v21  ;;  %2335 = vmatprep.subr.mxu1 %v2399_v2 }
 0xb01   :  { %v1672_v32 = vpop.permute.xlu1 %1671  ;;  %v1684_v1 = vpop.permute.xlu0 %1683 }
 0xb02   :  { %v1687_v36 = vsel %vm151_vm4, %v1684_v1, %v2537_v14  ;;  %v1686_v37 = vsel %vm151_vm4, %v1682_v24, %v1684_v1  ;;  %v1675_v13 = vsel %vm136_vm5, %v1672_v32, %v2539_v15  ;;  %v1674_v35 = vsel %vm136_vm5, %v1670_v9, %v1672_v32 }
 0xb03   :  { %1719 = vmatprep.subr.mxu0 %v1686_v37  ;;  %2336 = vmatpush3.msra.mxu1 %v1687_v36 }
 0xb04   :  { %1720 = vmatpush1.msra.mxu0 %v1685_v0  ;;  %2337 = vmatprep.subr.mxu1 %v2399_v2 }
 0xb05   :  { %v1650_v39 = vpop.permute.xlu1 %1649  ;;  %1721 = vmatprep.subr.mxu0 %v1674_v35  ;;  %2338 = vmatpush3.msra.mxu1 %v1675_v13  ;;  %v1661_v14 = vpop.permute.xlu0 %1660 }
 0xb06   :  { %1722 = vmatpush1.msra.mxu0 %v1673_v38  ;;  %2339 = vmatprep.subr.mxu1 %v2399_v2  ;;  %v1663_v40 = vsel %vm121_vm6, %v1659_v5, %v1661_v14  ;;  %v1652_v15 = vsel %vm109_vm7, %v1648_v18, %v1650_v39 }
 0xb07   :  { %1723 = vmatprep.subr.mxu0 %v1663_v40  ;;  %2340 = vmatpush3.msra.mxu1 %v1661_v14 }
 0xb08   :  { %1724 = vmatpush1.msra.mxu0 %v1662_v56  ;;  %2341 = vmatprep.subr.mxu1 %v2399_v2 }
 0xb09   :  { %v1628_v43 = vpop.permute.xlu1 %1627  ;;  %1725 = vmatprep.subr.mxu0 %v1652_v15  ;;  %2342 = vmatpush3.msra.mxu1 %v1650_v39  ;;  %v1639_v11 = vpop.permute.xlu0 %1638 }
 0xb0a   :  { %1726 = vmatpush1.msra.mxu0 %v1651_v4  ;;  %2343 = vmatprep.subr.mxu1 %v2399_v2  ;;  %v1641_v17 = vsel %vm97_vm8, %v1637_v12, %v1639_v11  ;;  %v1630_v51 = vsel %vm85_vm9, %v1626_v25, %v1628_v43 }
 0xb0b   :  { %1727 = vmatprep.subr.mxu0 %v1641_v17  ;;  %2344 = vmatpush3.msra.mxu1 %v1639_v11 }
 0xb0c   :  { %1728 = vmatpush1.msra.mxu0 %v1640_v46  ;;  %2345 = vmatprep.subr.mxu1 %v2399_v2 }
 0xb0d   :  { %v1613_v48 = vpop.permute.xlu1 %1612  ;;  %1729 = vmatprep.subr.mxu0 %v1630_v51  ;;  %2346 = vmatpush3.msra.mxu1 %v1628_v43  ;;  %v1617_v3 = vpop.permute.xlu0 %1616 }
 0xb0e   :  { %v1618_v8 = vsel %vm73_vm10, %v1613_v48, %v1615_v16  ;;  %1730 = vmatpush1.msra.mxu0 %v1629_v47  ;;  %2347 = vmatprep.subr.mxu1 %v2399_v2  ;;  %v1619_v50 = vsel %vm73_vm10, %v1615_v16, %v1617_v3 }
 0xb0f   :  { %1731 = vmatprep.subr.mxu0 %v1619_v50  ;;  %2348 = vmatpush3.msra.mxu1 %v1617_v3 }
 0xb10   :  { %1732 = vmatpush1.msra.mxu0 %v1618_v8  ;;  %2349 = vmatprep.subr.mxu1 %v2399_v2 }
 0xb11   :  { %1733 = vmatprep.subr.mxu0 %v3270_v41  ;;  %2350 = vmatpush3.msk.msra.mxu1 %vm63_vm1, %v3284_v27 }
 0xb12   :  { %2121 = vmatpush1.msk.msra.mxu0 %vm2581_vm12, %v3258_v54  ;;  %2352 = vmatmul.mubr.msk.f32.vlgmr.msra.gmra.mxu1 %vm178_vm11, %v3091_v10 }
 0xb13   :  { %2122 = vmatmul.mubr.msk.f32.vlgmr.msra.gmra.mxu0 %vm178_vm11, %v3091_v10  ;;  %2354 = vmatprep.subr.mxu1 %v2399_v2 }
 0xb14   :  { %2372 = vmatprep.mubr.msk.f32.mxu1 %vm2409_vm2, %v2399_v2  ;;  %2005 = vmatprep.mubr.f32.mxu0 %v2399_v2 }
 0xbd2   :  { %v1840_v41 = vpop.f32.mrf.mxu1 }
 0xbd3   :  { %v1841_v49 = vadd.f32 %v1840_v41, %v2599_v61  ;;  %v1769_v54 = vpop.f32.mrf.mxu0 }
 0xbd4   :  { %v2353_v27 = vpop.f32.mrf.mxu1  ;;  %v1770_v10 = vadd.f32 %v1769_v54, %v2599_v61 }
 0xbd5   :  { %v1846_v63 = vmax.f32 %v1841_v49, 0.0  ;;  %v1771_v53 = vpop.f32.mrf.mxu0 }
 0xbd6   :  { %v1844_v52 = vmax.f32 %v1770_v10, 0.0  ;;  %v1772_v23 = vadd.f32 %v1771_v53, %v2599_v61 }
 0xbd7   :  { %v3349_v60 = vmul.f32 %v3105_v20, %v1846_v63 }
 0xbd8   :  { %v3365_v20 = vmul.f32 %v3126_v28, %v1844_v52  ;;  %v1845_v28 = vmax.f32 %v1772_v23, 0.0 }
 0xbd9   :  { %1923 = vrot.lane.b32.xlu0 %v3349_v60, %s2402_s13  ;;  %1934 = vrot.lane.b32.xlu1 %v3349_v60, %s2401_s12 }
 0xbda   :  { %v3385_v55 = vmul.f32 %v3151_v34, %v1845_v28 }
 0xbdd   :  { %1901 = vrot.lane.b32.xlu0 %v3349_v60, %s2405_s16  ;;  %1912 = vrot.lane.b32.xlu1 %v3349_v60, %s2403_s14 }
 0xbe1   :  { %1879 = vrot.lane.b32.xlu0 %v3349_v60, %s2404_s15  ;;  %1890 = vrot.lane.b32.xlu1 %v3349_v60, %s2407_s18 }
 0xbe5   :  { %1868 = vrot.lane.b32.xlu1 %v3349_v60, %s2408_s19  ;;  %1930 = vrot.lane.b32.xlu0 %v3365_v20, %s2401_s12 }
 0xbe9   :  { %1919 = vrot.lane.b32.xlu1 %v3365_v20, %s2402_s13  ;;  %1908 = vrot.lane.b32.xlu0 %v3365_v20, %s2403_s14 }
 0xbed   :  { %1897 = vrot.lane.b32.xlu1 %v3365_v20, %s2405_s16  ;;  %1886 = vrot.lane.b32.xlu0 %v3365_v20, %s2407_s18 }
 0xbf1   :  { %1875 = vrot.lane.b32.xlu1 %v3365_v20, %s2404_s15  ;;  %1864 = vrot.lane.b32.xlu0 %v3365_v20, %s2408_s19 }
 0xbf5   :  { %1921 = vrot.lane.b32.xlu1 %v3385_v55, %s2402_s13  ;;  %1932 = vrot.lane.b32.xlu0 %v3385_v55, %s2401_s12 }
 0xbf9   :  { %1899 = vrot.lane.b32.xlu1 %v3385_v55, %s2405_s16  ;;  %1910 = vrot.lane.b32.xlu0 %v3385_v55, %s2403_s14 }
 0xbfd   :  { %1877 = vrot.lane.b32.xlu1 %v3385_v55, %s2404_s15  ;;  %1888 = vrot.lane.b32.xlu0 %v3385_v55, %s2407_s18 }
 0xc01   :  { %1855 = vrot.lane.b32.xlu1 %v3385_v55, %s2406_s17  ;;  %1866 = vrot.lane.b32.xlu0 %v3385_v55, %s2408_s19 }
 0xc05   :  { %1853 = vrot.lane.b32.xlu1 %v3365_v20, %s2406_s17  ;;  %1857 = vrot.lane.b32.xlu0 %v3349_v60, %s2406_s17 }
 0xc4b   :  { %v1924_v61 = vpop.permute.xlu0 %1923  ;;  %v1935_v34 = vpop.permute.xlu1 %1934 }
 0xc4c   :  { %2355 = vmatpush3.msra.mxu1 %v1935_v34 }
 0xc4d   :  { %2356 = vmatprep.subr.mxu1 %v2399_v2 }
 0xc4e   :  { %2357 = vmatpush3.msra.mxu1 %v1924_v61 }
 0xc4f   :  { %v1902_v57 = vpop.permute.xlu0 %1901  ;;  %2358 = vmatprep.subr.mxu1 %v2399_v2  ;;  %v1913_v59 = vpop.permute.xlu1 %1912 }
 0xc50   :  { %2359 = vmatpush3.msra.mxu1 %v1913_v59 }
 0xc51   :  { %2360 = vmatprep.subr.mxu1 %v2399_v2 }
 0xc52   :  { %2361 = vmatpush3.msra.mxu1 %v1902_v57 }
 0xc53   :  { %v1880_v62 = vpop.permute.xlu0 %1879  ;;  %2362 = vmatprep.subr.mxu1 %v2399_v2  ;;  %v1891_v24 = vpop.permute.xlu1 %1890 }
 0xc54   :  { %2363 = vmatpush3.msra.mxu1 %v1891_v24 }
 0xc55   :  { %2364 = vmatprep.subr.mxu1 %v2399_v2 }
 0xc56   :  { %2365 = vmatpush3.msra.mxu1 %v1880_v62 }
 0xc57   :  { %2366 = vmatprep.subr.mxu1 %v2399_v2  ;;  %v1869_v5 = vpop.permute.xlu1 %1868  ;;  %v1931_v6 = vpop.permute.xlu0 %1930 }
 0xc58   :  { %2367 = vmatpush3.msra.mxu1 %v1869_v5 }
 0xc59   :  { %2368 = vmatprep.subr.mxu1 %v2399_v2 }
 0xc5b   :  { %v1920_v12 = vpop.permute.xlu1 %1919  ;;  %v1909_v9 = vpop.permute.xlu0 %1908 }
 0xc5f   :  { %v1898_v16 = vpop.permute.xlu1 %1897  ;;  %v1887_v18 = vpop.permute.xlu0 %1886 }
 0xc63   :  { %v1876_v22 = vpop.permute.xlu1 %1875  ;;  %v1865_v25 = vpop.permute.xlu0 %1864 }
 0xc67   :  { %v1922_v26 = vpop.permute.xlu1 %1921  ;;  %v1933_v30 = vpop.permute.xlu0 %1932 }
 0xc68   :  { %v1936_v21 = vsel %vm166_vm3, %v1931_v6, %v1933_v30  ;;  %v1937_v32 = vsel %vm166_vm3, %v1933_v30, %v1935_v34  ;;  %v1926_v1 = vsel %vm151_vm4, %v1922_v26, %v1924_v61  ;;  %v1925_v36 = vsel %vm151_vm4, %v1920_v12, %v1922_v26 }
 0xc69   :  { %1955 = vmatprep.subr.mxu0 %v1937_v32 }
 0xc6a   :  { %1956 = vmatpush1.msra.mxu0 %v1936_v21 }
 0xc6b   :  { %v1900_v37 = vpop.permute.xlu1 %1899  ;;  %1957 = vmatprep.subr.mxu0 %v1926_v1  ;;  %v1911_v0 = vpop.permute.xlu0 %1910 }
 0xc6c   :  { %v1914_v13 = vsel %vm136_vm5, %v1909_v9, %v1911_v0  ;;  %1958 = vmatpush1.msra.mxu0 %v1925_v36  ;;  %v1915_v35 = vsel %vm136_vm5, %v1911_v0, %v1913_v59  ;;  %v1904_v38 = vsel %vm121_vm6, %v1900_v37, %v1902_v57  ;;  %v1903_v39 = vsel %vm121_vm6, %v1898_v16, %v1900_v37 }
 0xc6d   :  { %1959 = vmatprep.subr.mxu0 %v1915_v35 }
 0xc6e   :  { %1960 = vmatpush1.msra.mxu0 %v1914_v13 }
 0xc6f   :  { %v1878_v14 = vpop.permute.xlu1 %1877  ;;  %1961 = vmatprep.subr.mxu0 %v1904_v38  ;;  %v1889_v40 = vpop.permute.xlu0 %1888 }
 0xc70   :  { %v1892_v56 = vsel %vm109_vm7, %v1887_v18, %v1889_v40  ;;  %1962 = vmatpush1.msra.mxu0 %v1903_v39  ;;  %v1893_v15 = vsel %vm109_vm7, %v1889_v40, %v1891_v24  ;;  %v1882_v4 = vsel %vm97_vm8, %v1878_v14, %v1880_v62  ;;  %v1881_v43 = vsel %vm97_vm8, %v1876_v22, %v1878_v14 }
 0xc71   :  { %1963 = vmatprep.subr.mxu0 %v1893_v15 }
 0xc72   :  { %1964 = vmatpush1.msra.mxu0 %v1892_v56 }
 0xc73   :  { %v1856_v11 = vpop.permute.xlu1 %1855  ;;  %1965 = vmatprep.subr.mxu0 %v1882_v4  ;;  %v1867_v17 = vpop.permute.xlu0 %1866 }
 0xc74   :  { %v1870_v46 = vsel %vm85_vm9, %v1865_v25, %v1867_v17  ;;  %1966 = vmatpush1.msra.mxu0 %v1881_v43  ;;  %v1871_v51 = vsel %vm85_vm9, %v1867_v17, %v1869_v5 }
 0xc75   :  { %1967 = vmatprep.subr.mxu0 %v1871_v51 }
 0xc76   :  { %1968 = vmatpush1.msra.mxu0 %v1870_v46 }
 0xc77   :  { %v1854_v47 = vpop.permute.xlu1 %1853  ;;  %v1858_v48 = vpop.permute.xlu0 %1857 }
 0xc78   :  { %v1859_v3 = vsel %vm73_vm10, %v1854_v47, %v1856_v11  ;;  %2369 = vmatpush3.msra.mxu1 %v1858_v48  ;;  %v1860_v8 = vsel %vm73_vm10, %v1856_v11, %v1858_v48 }
 0xc79   :  { %1969 = vmatprep.subr.mxu0 %v1860_v8  ;;  %2370 = vmatprep.subr.mxu1 %v2399_v2 }
 0xc7a   :  { %1970 = vmatpush1.msra.mxu0 %v1859_v3  ;;  %2371 = vmatpush3.msra.mxu1 %v3349_v60 }
 0xc7b   :  { %1971 = vmatprep.subr.mxu0 %v3385_v55  ;;  %2373 = vmatmul.mubr.msk.f32.vlgmr.msra.gmra.mxu1 %vm178_vm11, %v3205_v31 }
 0xc7c   :  { %1972 = vmatpush1.msra.mxu0 %v3365_v20 }
 0xc7d   :  { %2125 = vmatmul.mubr.msk.f32.vlgmr.msra.gmra.mxu0 %vm178_vm11, %v3205_v31 }
 0xd3b   :  { %v2078_v50 = vpop.f32.mrf.mxu1 }
 0xd3c   :  { %v2079_v41 = vadd.f32 %v2078_v50, %v2722_v7 }
 0xd3d   :  { %v2007_v49 = vpop.f32.mrf.mxu0  ;;  %v2374_v27 = vpop.f32.mrf.mxu1 }
 0xd3e   :  { %v2084_v2 = vmul.f32 %v3223_v29, %v2079_v41  ;;  %v2008_v63 = vadd.f32 %v2007_v49, %v2722_v7 }
 0xd3f   :  { %v2009_v60 = vpop.f32.mrf.mxu0 }
 0xd40   :  { %v2087_v54 = vmul.f32 %v2084_v2, %v2952_v33  ;;  %v2082_v10 = vmul.f32 %v3231_v58, %v2008_v63  ;;  %v2010_v52 = vadd.f32 %v2009_v60, %v2722_v7 }
 0xd42   :  { %v2090_v20 = vadd.f32 %v2087_v54, %v3236_v42  ;;  %v2085_v31 = vmul.f32 %v2082_v10, %v2952_v33  ;;  %v2083_v53 = vmul.f32 %v3243_v44, %v2010_v52 }
 0xd44   :  { %v2088_v23 = vadd.f32 %v2085_v31, %v3247_v45  ;;  %2094 = vst.msk [vmem:[%s3467_s8 + $0x10] sm:$0xff] %vm2093_vm13, %v2090_v20  ;;  %v2086_v29 = vmul.f32 %v2083_v53, %v2952_v33 }
 0xd46   :  { %2091 = vst [vmem:[%s3467_s8] sm:$0xff] %v2088_v23  ;;  %v2089_v7 = vadd.f32 %v2086_v29, %v3252_v19 }
 0xd48   :  { %2092 = vst [vmem:[%s3467_s8 + $0x8] sm:$0xff] %v2089_v7 }

</bundles_post_ra>
